<compile_context>
chip_gen: v7x
topology: tpu7x:2x2x1
jax: 0.10.0
libtpu: 0.0.40
codegen_flags: <defaults>
</compile_context>

<pallas_src>
import functools
import numpy as np
import jax
import jax.numpy as jnp
from jax.experimental import pallas as pl
from jax.experimental.pallas import tpu as pltpu

LANE = 128
SUBLANE = 8


def _round_up(x, m):
    return (x + m - 1) // m * m


# ----------------------------- Pallas kernel --------------------------------
def _graphspn_kernel(f_ref, wmu_ref, wvar_ref, logw_ref, out_ref,
                     *, nc, ipad_n, ipad_e):
    f = f_ref[...]                                   # (F, TB) f32, batch on lanes

    # One pair of MXU dots produces the padded per-input-distribution log
    # likelihoods of ALL nc node networks and ALL nc edge networks at once:
    #   t[c*ipad_n + i, b]           = sum_{d,k} log N(z[b,d,k]; mu,var) + logw_n[c,i]
    #   t[base_e + c*ipad_e + i, b]  = sum over edge vars                 + logw_e[c,i]
    # -0.5/var is pre-folded into wvar; the per-column constant (incl. -1e30
    # sentinel on padded columns) is folded into wmu via the constant "ones"
    # feature row.
    t = (jnp.dot(wmu_ref[...], f, preferred_element_type=jnp.float32)
         + jnp.dot(wvar_ref[...], f * f, preferred_element_type=jnp.float32))

    base_e = nc * ipad_n
    acc = None
    for c in range(nc):                              # nc small & static -> unrolled
        # root sum of node network c: logsumexp over the (padded) I axis
        tn = t[c * ipad_n:(c + 1) * ipad_n, :]       # 128-row aligned sublane slice
        mn = jnp.max(tn, axis=0, keepdims=True)
        ll_n = mn + jnp.log(jnp.sum(jnp.exp(tn - mn), axis=0, keepdims=True))

        te = t[base_e + c * ipad_e: base_e + (c + 1) * ipad_e, :]
        me = jnp.max(te, axis=0, keepdims=True)
        ll_e = me + jnp.log(jnp.sum(jnp.exp(te - me), axis=0, keepdims=True))

        s = ll_n + ll_e + logw_ref[c]                # mixture log-weight from SMEM
        if acc is None:
            acc = s
        else:                                        # running logsumexp over components
            mx = jnp.maximum(acc, s)
            acc = mx + jnp.log(jnp.exp(acc - mx) + jnp.exp(s - mx))

    out_ref[...] = acc                               # (1, TB) lane-dense store


def graphspn_pallas(feat_t, packed, nc, *, tile_b=128):
    """feat_t: (F, B) transposed feature matrix [z | l | 1 | 0-pad]."""
    F, B = feat_t.shape
    wmu_t, wvar_t = packed["wmu_t"], packed["wvar_t"]
    ipad_n, ipad_e = packed["ipad_n"], packed["ipad_e"]
    ctot = wmu_t.shape[0]

    # pad batch (lane axis) to a multiple of the tile; padded lanes produce
    # finite garbage that is sliced off below.
    b_pad = _round_up(max(B, 1), tile_b)
    if b_pad != B:
        feat_t = jnp.pad(feat_t, ((0, 0), (0, b_pad - B)))

    flops = 4 * ctot * F * b_pad
    transcendentals = b_pad * (ctot + 6 * nc)
    bytes_accessed = 4 * (F * b_pad + 2 * ctot * F + b_pad + nc)

    out = pl.pallas_call(
        functools.partial(_graphspn_kernel, nc=nc, ipad_n=ipad_n, ipad_e=ipad_e),
        out_shape=jax.ShapeDtypeStruct((1, b_pad), jnp.float32),
        grid=(b_pad // tile_b,),
        in_specs=[
            pl.BlockSpec((F, tile_b), lambda i: (0, i)),          # activation tile
            pl.BlockSpec(wmu_t.shape, lambda i: (0, 0)),          # resident weights
            pl.BlockSpec(wvar_t.shape, lambda i: (0, 0)),
            pl.BlockSpec(memory_space=pltpu.MemorySpace.SMEM),    # logw (nc,) scalars
        ],
        out_specs=pl.BlockSpec((1, tile_b), lambda i: (0, i)),
        compiler_params=pltpu.CompilerParams(
            dimension_semantics=("parallel",)),
        cost_estimate=pl.CostEstimate(
            flops=flops, transcendentals=transcendentals,
            bytes_accessed=bytes_accessed),
    )(feat_t, wmu_t, wvar_t, packed["logw1d"])
    return out[0, :B]


# ------------------------------ parameter packing ----------------------------
def _pack_normal(mu, var, root_logw, ipad):
    """mu, var: (C, D, I, K); root_logw: (C, I).

    Returns component-collapsed, lane-padded weights:
      Wmu  : (D*K, C*ipad)  coefficient of y    ( mu/var )
      Wvar : (D*K, C*ipad)  coefficient of y*y  ( -0.5/var )
      Brow : (C*ipad,)      per-column constant ( sum_dk(-0.5*mu^2/var
                             - 0.5*log(2*pi*var)) + root_logw ), -1e30 in
                             padded columns so the logsumexp ignores them.
    """
    C, D, I, K = mu.shape
    inv = 1.0 / var
    wmu = jnp.transpose(mu * inv, (0, 1, 3, 2)).reshape(C, D * K, I)
    wvar = jnp.transpose(-0.5 * inv, (0, 1, 3, 2)).reshape(C, D * K, I)
    b = jnp.sum(-0.5 * mu * mu * inv - 0.5 * jnp.log(2.0 * jnp.pi * var),
                axis=(1, 3)) + root_logw                                 # (C, I)

    wmu_p = jnp.zeros((C, D * K, ipad), jnp.float32).at[:, :, :I].set(wmu)
    wvar_p = jnp.zeros((C, D * K, ipad), jnp.float32).at[:, :, :I].set(wvar)
    b_p = jnp.full((C, ipad), -1e30, jnp.float32).at[:, :I].set(b)

    w_mu = jnp.transpose(wmu_p, (1, 0, 2)).reshape(D * K, C * ipad)
    w_var = jnp.transpose(wvar_p, (1, 0, 2)).reshape(D * K, C * ipad)
    b_row = b_p.reshape(C * ipad)
    return (w_mu.astype(jnp.float32), w_var.astype(jnp.float32),
            b_row.astype(jnp.float32))


def init_params(key, nc, nd_n, nk_n, nd_e, nk_e, ni_n, ni_e,
                min_var=1e-6, max_var=0.01):
    ks = jax.random.split(key, 7)
    mu_n = 0.5 + 0.3 * jax.random.normal(ks[0], (nc, nd_n, ni_n, nk_n), jnp.float32)
    mu_e = 0.5 + 0.3 * jax.random.normal(ks[1], (nc, nd_e, ni_e, nk_e), jnp.float32)
    var_n = min_var + (max_var - min_var) * jax.nn.sigmoid(
        jax.random.normal(ks[2], (nc, nd_n, ni_n, nk_n), jnp.float32))
    var_e = min_var + (max_var - min_var) * jax.nn.sigmoid(
        jax.random.normal(ks[3], (nc, nd_e, ni_e, nk_e), jnp.float32))
    # root-sum log-weights of each einsum network
    wn = jax.nn.log_softmax(jax.random.normal(ks[4], (nc, ni_n), jnp.float32), axis=1)
    we = jax.nn.log_softmax(jax.random.normal(ks[5], (nc, ni_e), jnp.float32), axis=1)
    # top-level mixture weights (matches torch.log_softmax(torch.randn(1, nc)))
    logw = jax.nn.log_softmax(jax.random.normal(ks[6], (1, nc), jnp.float32), axis=1)

    dkn, dke = nd_n * nk_n, nd_e * nk_e
    ipad_n = _round_up(ni_n, LANE)
    ipad_e = _round_up(ni_e, LANE)
    pn, pe = nc * ipad_n, nc * ipad_e

    wmu_n, wvar_n, bn = _pack_normal(mu_n, var_n, wn, ipad_n)   # (dkn, Pn), (Pn,)
    wmu_e, wvar_e, be = _pack_normal(mu_e, var_e, we, ipad_e)   # (dke, Pe), (Pe,)

    # block-diagonal feature->column packing; extra "ones" feature row carries
    # the per-column bias; rows padded to a sublane multiple stay zero.
    f_real = dkn + dke + 1
    f_dim = _round_up(f_real, SUBLANE)
    w_mu = jnp.zeros((f_dim, pn + pe), jnp.float32)
    w_mu = w_mu.at[:dkn, :pn].set(wmu_n).at[dkn:dkn + dke, pn:].set(wmu_e)
    w_mu = w_mu.at[dkn + dke, :pn].set(bn).at[dkn + dke, pn:].set(be)
    w_var = jnp.zeros((f_dim, pn + pe), jnp.float32)
    w_var = w_var.at[:dkn, :pn].set(wvar_n).at[dkn:dkn + dke, pn:].set(wvar_e)

    packed = dict(wmu_t=jnp.asarray(w_mu.T),          # (nc*(ipad_n+ipad_e), F)
                  wvar_t=jnp.asarray(w_var.T),
                  logw1d=logw[0].astype(jnp.float32),
                  ipad_n=ipad_n, ipad_e=ipad_e,
                  dkn=dkn, dke=dke, f_dim=f_dim)
    raw = dict(mu_n=mu_n, var_n=var_n, wn=wn,
               mu_e=mu_e, var_e=var_e, we=we, logw=logw)
    return packed, raw


# ------------------------------ forward (glue) -------------------------------
def graphspn_forward(x, a, packed, nc, nd_n, nk_n, nk_e, dc_n, dc_e, noise_key,
                     tile_b=128):
    B = x.shape[0]
    nd_e = nd_n * (nd_n - 1) // 2
    k1, k2 = jax.random.split(noise_key)
    # dequantization (torch.rand -> U[0,1))
    z = x.astype(jnp.float32) + dc_n * jax.random.uniform(k1, x.shape, jnp.float32)
    a = a.astype(jnp.float32) + dc_e * jax.random.uniform(k2, a.shape, jnp.float32)
    # strictly-lower-triangular gather, row-major == torch boolean-mask order
    rows, cols = np.tril_indices(nd_n, k=-1)
    l = a[:, rows, cols, :]                                   # (B, nd_e, nk_e)

    dkn, dke, f_dim = packed["dkn"], packed["dke"], packed["f_dim"]
    feat = jnp.concatenate(
        [z.reshape(B, dkn), l.reshape(B, dke),
         jnp.ones((B, 1), jnp.float32),
         jnp.zeros((B, f_dim - (dkn + dke + 1)), jnp.float32)], axis=1)  # (B, F)
    out = graphspn_pallas(feat.T, packed, nc, tile_b=tile_b)
    return out, z, l


# ------------------------------ pure-JAX reference ---------------------------
def reference_forward(z, l, raw):
    def net_ll(y, mu, var, w):
        d = y[:, None, :, None, :] - mu[None]                 # (B,C,D,I,K)
        leaf = -0.5 * (d * d / var[None] + jnp.log(2.0 * jnp.pi * var)[None])
        leaf = leaf.sum(axis=(2, 4))                          # (B,C,I)
        return jax.scipy.special.logsumexp(leaf + w[None], axis=2)  # (B,C)

    lln = net_ll(z, raw["mu_n"], raw["var_n"], raw["wn"])
    lle = net_ll(l, raw["mu_e"], raw["var_e"], raw["we"])
    return jax.scipy.special.logsumexp(lln + lle + raw["logw"], axis=1)


# ----------------------------------- main ------------------------------------
if __name__ == "__main__":
    # small config consistent with the module's constructor
    nc, nd_n = 2, 5
    nk_n, nk_e = 4, 3
    ni_n, ni_e = 8, 8
    dc_n, dc_e = 0.6, 0.6
    B = 200                     # non-multiple of the tile -> exercises padding
    TILE_B = 128                # 2 batch tiles -> megacore-shardable on v7x
    nd_e = nd_n * (nd_n - 1) // 2

    key = jax.random.PRNGKey(0)
    k_param, k_x, k_a, k_noise = jax.random.split(key, 4)

    packed, raw = init_params(k_param, nc, nd_n, nk_n, nd_e, nk_e, ni_n, ni_e)

    # synthetic one-hot node / edge inputs (as the model expects pre-dequant)
    x = jax.nn.one_hot(jax.random.randint(k_x, (B, nd_n), 0, nk_n), nk_n,
                       dtype=jnp.float32)                         # (B, nd_n, nk_n)
    a = jax.nn.one_hot(jax.random.randint(k_a, (B, nd_n, nd_n), 0, nk_e), nk_e,
                       dtype=jnp.float32)                         # (B, nd_n, nd_n, nk_e)

    out, z_deq, l_deq = graphspn_forward(x, a, packed, nc, nd_n, nk_n, nk_e,
                                         dc_n, dc_e, k_noise, tile_b=TILE_B)
    out = jax.block_until_ready(out)

    ref = reference_forward(z_deq, l_deq, raw)
    np.testing.assert_allclose(np.asarray(out), np.asarray(ref),
                               rtol=2e-3, atol=1e-1)

    print("KERNEL_OK")
</pallas_src>

<mosaic_0001>
module attributes {stable_mosaic.version = 11 : i64} {
  func.func @_graphspn_kernel(%arg0: i32, %arg1: memref<56x128xf32, #tpu.memory_space<vmem>>, %arg2: memref<512x56xf32, #tpu.memory_space<vmem>>, %arg3: memref<512x56xf32, #tpu.memory_space<vmem>>, %arg4: memref<2xf32, #tpu.memory_space<smem>>, %arg5: memref<1x128xf32, #tpu.memory_space<vmem>>) attributes {dimension_semantics = [#tpu.dimension_semantics<parallel>], iteration_bounds = array<i64: 2>, scalar_prefetch = 0 : i64, scratch_operands = 0 : i64, tpu.core_type = #tpu.core_type<tc>, window_params = [{transform_indices = @transform_0, window_bounds = array<i64: 56, 128>}, {pipeline_mode = #tpu.pipeline_mode<synchronous>, transform_indices = @transform_1, window_bounds = array<i64: 512, 56>}, {pipeline_mode = #tpu.pipeline_mode<synchronous>, transform_indices = @transform_2, window_bounds = array<i64: 512, 56>}, {transform_indices = @transform_3, window_bounds = array<i64: 2>}, {transform_indices = @transform_4, window_bounds = array<i64: 1, 128>}]} {
    %c0 = arith.constant 0 : index
    %c0_0 = arith.constant 0 : index
    %0 = vector.load %arg1[%c0, %c0_0] : memref<56x128xf32, #tpu.memory_space<vmem>>, vector<56x128xf32>
    %c0_1 = arith.constant 0 : index
    %c0_2 = arith.constant 0 : index
    %1 = vector.load %arg2[%c0_1, %c0_2] : memref<512x56xf32, #tpu.memory_space<vmem>>, vector<512x56xf32>
    %cst = arith.constant dense<0.000000e+00> : vector<512x128xf32>
    %2 = tpu.matmul %1, %0, %cst {dimension_numbers = #tpu.dot_dimension_numbers<[1], [0], [0], [1], [0, 0, 1, 1], [], []>} : vector<512x56xf32>, vector<56x128xf32>, vector<512x128xf32> -> vector<512x128xf32>
    %c0_3 = arith.constant 0 : index
    %c0_4 = arith.constant 0 : index
    %3 = vector.load %arg3[%c0_3, %c0_4] : memref<512x56xf32, #tpu.memory_space<vmem>>, vector<512x56xf32>
    %4 = arith.mulf %0, %0 : vector<56x128xf32>
    %cst_5 = arith.constant dense<0.000000e+00> : vector<512x128xf32>
    %5 = tpu.matmul %3, %4, %cst_5 {dimension_numbers = #tpu.dot_dimension_numbers<[1], [0], [0], [1], [0, 0, 1, 1], [], []>} : vector<512x56xf32>, vector<56x128xf32>, vector<512x128xf32> -> vector<512x128xf32>
    %6 = arith.addf %2, %5 : vector<512x128xf32>
    %7 = vector.extract_strided_slice %6 {offsets = [0, 0], sizes = [128, 128], strides = [1, 1]} : vector<512x128xf32> to vector<128x128xf32>
    %cst_6 = arith.constant dense<0xFF800000> : vector<128xf32>
    %8 = vector.multi_reduction <maximumf>, %7, %cst_6 [0] : vector<128x128xf32> to vector<128xf32>
    %9 = vector.shape_cast %8 : vector<128xf32> to vector<1x128xf32>
    %10 = vector.broadcast %9 : vector<1x128xf32> to vector<128x128xf32>
    %11 = arith.subf %7, %10 : vector<128x128xf32>
    %12 = math.exp %11 : vector<128x128xf32>
    %cst_7 = arith.constant dense<0.000000e+00> : vector<128xf32>
    %13 = vector.multi_reduction <add>, %12, %cst_7 [0] : vector<128x128xf32> to vector<128xf32>
    %14 = vector.shape_cast %13 : vector<128xf32> to vector<1x128xf32>
    %15 = math.log %14 : vector<1x128xf32>
    %16 = arith.addf %9, %15 : vector<1x128xf32>
    %17 = vector.extract_strided_slice %6 {offsets = [256, 0], sizes = [128, 128], strides = [1, 1]} : vector<512x128xf32> to vector<128x128xf32>
    %cst_8 = arith.constant dense<0xFF800000> : vector<128xf32>
    %18 = vector.multi_reduction <maximumf>, %17, %cst_8 [0] : vector<128x128xf32> to vector<128xf32>
    %19 = vector.shape_cast %18 : vector<128xf32> to vector<1x128xf32>
    %20 = vector.broadcast %19 : vector<1x128xf32> to vector<128x128xf32>
    %21 = arith.subf %17, %20 : vector<128x128xf32>
    %22 = math.exp %21 : vector<128x128xf32>
    %cst_9 = arith.constant dense<0.000000e+00> : vector<128xf32>
    %23 = vector.multi_reduction <add>, %22, %cst_9 [0] : vector<128x128xf32> to vector<128xf32>
    %24 = vector.shape_cast %23 : vector<128xf32> to vector<1x128xf32>
    %25 = math.log %24 : vector<1x128xf32>
    %26 = arith.addf %19, %25 : vector<1x128xf32>
    %27 = arith.addf %16, %26 : vector<1x128xf32>
    %c0_10 = arith.constant 0 : index
    %28 = memref.load %arg4[%c0_10] : memref<2xf32, #tpu.memory_space<smem>>
    %29 = vector.broadcast %28 : f32 to vector<1x128xf32>
    %30 = arith.addf %27, %29 : vector<1x128xf32>
    %31 = vector.extract_strided_slice %6 {offsets = [128, 0], sizes = [128, 128], strides = [1, 1]} : vector<512x128xf32> to vector<128x128xf32>
    %cst_11 = arith.constant dense<0xFF800000> : vector<128xf32>
    %32 = vector.multi_reduction <maximumf>, %31, %cst_11 [0] : vector<128x128xf32> to vector<128xf32>
    %33 = vector.shape_cast %32 : vector<128xf32> to vector<1x128xf32>
    %34 = vector.broadcast %33 : vector<1x128xf32> to vector<128x128xf32>
    %35 = arith.subf %31, %34 : vector<128x128xf32>
    %36 = math.exp %35 : vector<128x128xf32>
    %cst_12 = arith.constant dense<0.000000e+00> : vector<128xf32>
    %37 = vector.multi_reduction <add>, %36, %cst_12 [0] : vector<128x128xf32> to vector<128xf32>
    %38 = vector.shape_cast %37 : vector<128xf32> to vector<1x128xf32>
    %39 = math.log %38 : vector<1x128xf32>
    %40 = arith.addf %33, %39 : vector<1x128xf32>
    %41 = vector.extract_strided_slice %6 {offsets = [384, 0], sizes = [128, 128], strides = [1, 1]} : vector<512x128xf32> to vector<128x128xf32>
    %cst_13 = arith.constant dense<0xFF800000> : vector<128xf32>
    %42 = vector.multi_reduction <maximumf>, %41, %cst_13 [0] : vector<128x128xf32> to vector<128xf32>
    %43 = vector.shape_cast %42 : vector<128xf32> to vector<1x128xf32>
    %44 = vector.broadcast %43 : vector<1x128xf32> to vector<128x128xf32>
    %45 = arith.subf %41, %44 : vector<128x128xf32>
    %46 = math.exp %45 : vector<128x128xf32>
    %cst_14 = arith.constant dense<0.000000e+00> : vector<128xf32>
    %47 = vector.multi_reduction <add>, %46, %cst_14 [0] : vector<128x128xf32> to vector<128xf32>
    %48 = vector.shape_cast %47 : vector<128xf32> to vector<1x128xf32>
    %49 = math.log %48 : vector<1x128xf32>
    %50 = arith.addf %43, %49 : vector<1x128xf32>
    %51 = arith.addf %40, %50 : vector<1x128xf32>
    %c1 = arith.constant 1 : index
    %52 = memref.load %arg4[%c1] : memref<2xf32, #tpu.memory_space<smem>>
    %53 = vector.broadcast %52 : f32 to vector<1x128xf32>
    %54 = arith.addf %51, %53 : vector<1x128xf32>
    %55 = arith.maximumf %30, %54 : vector<1x128xf32>
    %56 = arith.subf %30, %55 : vector<1x128xf32>
    %57 = math.exp %56 : vector<1x128xf32>
    %58 = arith.subf %54, %55 : vector<1x128xf32>
    %59 = math.exp %58 : vector<1x128xf32>
    %60 = arith.addf %57, %59 : vector<1x128xf32>
    %61 = math.log %60 : vector<1x128xf32>
    %62 = arith.addf %55, %61 : vector<1x128xf32>
    %c0_15 = arith.constant 0 : index
    %c0_16 = arith.constant 0 : index
    %63 = vector.load %arg5[%c0_15, %c0_16] : memref<1x128xf32, #tpu.memory_space<vmem>>, vector<1x128xf32>
    tpu.vector_store %arg5[%c0_15, %c0_16], %62 {strides = array<i32>} : memref<1x128xf32, #tpu.memory_space<vmem>>, vector<1x128xf32>,
    return
  }
  func.func @transform_0(%arg0: i32) -> (i32, i32) {
    %c0_i32 = arith.constant 0 : i32
    %c0_i32_0 = arith.constant 0 : i32
    return %c0_i32, %arg0 : i32, i32
  }
  func.func @transform_1(%arg0: i32) -> (i32, i32) {
    %c0_i32 = arith.constant 0 : i32
    %c0_i32_0 = arith.constant 0 : i32
    %c0_i32_1 = arith.constant 0 : i32
    return %c0_i32, %c0_i32_0 : i32, i32
  }
  func.func @transform_2(%arg0: i32) -> (i32, i32) {
    %c0_i32 = arith.constant 0 : i32
    %c0_i32_0 = arith.constant 0 : i32
    %c0_i32_1 = arith.constant 0 : i32
    return %c0_i32, %c0_i32_0 : i32, i32
  }
  func.func @transform_3(%arg0: i32) -> i32 {
    %c0_i32 = arith.constant 0 : i32
    %c0_i32_0 = arith.constant 0 : i32
    return %c0_i32 : i32
  }
  func.func @transform_4(%arg0: i32) -> (i32, i32) {
    %c0_i32 = arith.constant 0 : i32
    %c0_i32_0 = arith.constant 0 : i32
    return %c0_i32, %arg0 : i32, i32
  }
}

</mosaic_0001>

<bundles_post_ra>
// kernel: tpu_custom_call.1
= control target key start
LH: loop header
LB: loop body
LE: loop exit
PB: predicated region body
PF: predicated region fallthrough
CT: control target
= control target key end

     0   :  { %9 = vsyncpa [#allocation5], 0  ;;  %s3954_s0 = inlined_call_operand.vmem [shape: f32[56,256], index: 0, kind: input, shape index: {}]   ;;  %s3955_s1 = inlined_call_operand.vmem [shape: f32[512,56], index: 1, kind: input, shape index: {}]   ;;  %s3956_s2 = inlined_call_operand.vmem [shape: f32[512,56], index: 2, kind: input, shape index: {}]   ;;  %s3957_s3 = inlined_call_operand.vmem [shape: f32[2], index: 3, kind: input, shape index: {}]   ;;  %s3958_s4 = inlined_call_operand.hbm [shape: f32[1,256], index: 4, kind: output, shape index: {}]  }
   0x1   :  { %10 = vsyncpa [#allocation4], 0 }
   0x2   :  { %12 = vsyncpa [#allocation4 + $0x1], 0  ;;  %s2935_s15 = smov 0   ;;  %s2937_s16 = smov 0  }
   0x3   :  { %s2939_s17 = smov 0   ;;  %s2941_s18 = smov 0  }
   0x4 LB: > { %s2956_s19 = sadd.s32 4294967295, %s2906_s18   ;;  %s2042_s20 = sadd.s32 4294967294, %s2906_s18   ;;  %s2906_s18 = sphi %s2941_s18, %s3969_s18   ;;  %s2902_s17 = sphi %s2939_s17, %s3968_s17   ;;  %s2898_s16 = sphi %s2937_s16, %s3967_s16   ;;  %s2894_s15 = sphi %s2935_s15, %s3966_s15  }
   0x5   : > { %s2960_s21 = sadd.s32 1, %s2906_s18   ;;  %s25_s22 = sadd.s32 1, %s2902_s17 }
   0x6   : > { %s22_s23 = ssub.s32 %s2906_s18, %s2960_s21  ;;  %p32_p0 = scmp.ne.s32.totalorder %s2902_s17, %s2898_s16 }
   0x7   : > { %p23_p1 = scmp.eq.s32.totalorder %s22_s23, 0  ;;  %p33_p2 = scmp.eq.s32.totalorder %s2906_s18, 0 }
   0x8   : > { %p125_p3 = scmp.eq.s32.totalorder %s2956_s19, 1  ;;  %p130_p4 = scmp.ne.s32.totalorder %s2898_s16, %s2894_s15 }
   0x9   : > { %s2972_s24 = scalar_select %p23_p1, %s2902_s17, %s25_s22  }
   0xa   : > { %p2974_p5 = por %p33_p2, %p32_p0  ;;  %p2978_p6 = por %p125_p3, %p32_p0 }
   0xb   : > { %p131_p7 = scmp.eq.s32.totalorder %s2042_s20, 1  ;;  %p2043_p8 = scmp.ge.s32.totalorder %s2906_s18, 1 }
   0xc   : > { %s3961_s26 = scalar_select %p2978_p6, 1, 0 }
   0xd   : > { %p138_p9 = scmp.lt.s32.totalorder %s2906_s18, 3  ;;  %p2984_p10 = por %p131_p7, %p130_p4 }
   0xe   : > { %p2647_p11 = scmp.eq.s32.totalorder %s2956_s19, 0  ;;  %s157_s5 = sshll.u32 %s3957_s3, 4  ;;  %s158_s5 = int_to_ptr.vmem [resolvable:$true] %s157_s5 }
   0xf   : > { %s3962_s27 = scalar_select %p2984_p10, 1, 0 }
  0x10   : > { %p2989_p12 = pnand %p2043_p8, %p138_p9  ;;  %s2825_s6 = scalar_lea.vmem %s158_s5, 16 }
  0x11   : > { %p2826_p1 = scmp.ne.s32.totalorder %s158_s5, %s2825_s6  ;;  %p2833_p7 = scmp.lt.s32.totalorder %s158_s5, %s158_s5 }
  0x12   : > { %p2639_p13 = pneg %p2989_p12  ;;  %p2834_p8 = scmp.lt.s32.totalorder %s2825_s6, %s2825_s6 }
  0x14   : > { %p2640_p0 = pnand %p2647_p11, %p2639_p13  ;;  %p2835_p9 = por %p2834_p8, %p2833_p7 }
  0x16   : > { %p2827_p2 = pneg %p2640_p0 }
  0x18   : > { %p2828_p3 = pnand %p2827_p2, %p2826_p1 }
  0x1a   : > { %p2829_p4 = pneg %p2828_p3 }
  0x1c   : > { %p2836_p10 = pnand %p2835_p9, %p2829_p4 }
  0x1e   : > { %2839 = shalt.err (!%p2836_p10)
}
  0x1f   : > { %s2908_s7 = smov [#allocation3]   ;;  %p2045_p6 = scmp.ge.s32.totalorder %s2906_s18, 2 }
  0x20   : > { %2642 = dma.vmem_to_smem (!%p2640_p0), %s158_s5, 16, %s2908_s7, [#allocation5]  }
  0x21   : > { %164 = sbr.rel (%p2045_p6) target bundleno = 48 (0x30), region = 28 }
  0x28   : > { %167 = sbr.rel (!%p2974_p5) target bundleno = 48 (0x30), region = 32  ;;  %s169_s8 = sand.u32 (%p2974_p5), 1, %s2902_s17  }
  0x29   : > { %s2046_s9 = sshll.u32 (%p2974_p5), %s2906_s18, 3  ;;  %s2631_s10 = smul.u32 (%p2974_p5), 56, %s169_s8 }
  0x2a   : > { %s173_s13 = scalar_lea.vmem (%p2974_p5), %s3954_s0, %s2046_s9 }
  0x2b   : > { %v213_v0 = vld [vmem:[%s173_s13] sm:$0xff] (%p2974_p5)  ;;  %v215_v1 = vld [vmem:[%s173_s13 + $0x10] sm:$0xff] (%p2974_p5)  ;;  %s171_s14 = scalar_lea.vmem (%p2974_p5), [#allocation2], %s2631_s10 }
  0x2c   : > { %v217_v2 = vld [vmem:[%s173_s13 + $0x20] sm:$0xff] (%p2974_p5)  ;;  %v219_v3 = vld [vmem:[%s173_s13 + $0x30] sm:$0xff] (%p2974_p5)  ;;  %214 = vst [vmem:[%s171_s14] sm:$0xff] (%p2974_p5), %v213_v0  ;;  %216 = vst [vmem:[%s171_s14 + $0x8] sm:$0xff] (%p2974_p5), %v215_v1 }
  0x2d   : > { %v221_v4 = vld [vmem:[%s173_s13 + $0x40] sm:$0xff] (%p2974_p5)  ;;  %v223_v5 = vld [vmem:[%s173_s13 + $0x50] sm:$0xff] (%p2974_p5)  ;;  %218 = vst [vmem:[%s171_s14 + $0x10] sm:$0xff] (%p2974_p5), %v217_v2  ;;  %220 = vst [vmem:[%s171_s14 + $0x18] sm:$0xff] (%p2974_p5), %v219_v3 }
  0x2e   : > { %222 = vst [vmem:[%s171_s14 + $0x20] sm:$0xff] (%p2974_p5), %v221_v4  ;;  %224 = vst [vmem:[%s171_s14 + $0x28] sm:$0xff] (%p2974_p5), %v223_v5  ;;  %v225_v6 = vld [vmem:[%s173_s13 + $0x60] sm:$0xff] (%p2974_p5) }
  0x2f   : > { %226 = vst [vmem:[%s171_s14 + $0x30] sm:$0xff] %v225_v6 }
  0x30 PF: > { %235 = sbr.rel (%p2989_p12) target bundleno = 560 (0x230), region = 70  ;;  %s3013_s20 = sand.u32 (!%p2989_p12), 1, %s2898_s16  }
  0x31   : > { %s2632_s22 = smul.u32 (!%p2989_p12), 56, %s3013_s20 }
  0x33   : > { %s3016_s23 = scalar_lea.vmem (!%p2989_p12), [#allocation2], %s2632_s22 }
  0x37   : > { %2885 = dma.done.wait (%p2647_p11), [#allocation5], 16  }
  0x38   : > { %2887 = vsyncadd (%p2647_p11), [#allocation5], 4294967280 }
  0x39   : > { %248 = sfence }
  0x3a   : > { %v267_v7 = vld [vmem:[%s3016_s23] sm:$0xff]  ;;  %v268_v8 = vld [vmem:[%s3016_s23 + $0x8] sm:$0xff]  ;;  %v269_v9 = vld [vmem:[%s3016_s23 + $0x10] sm:$0xff]  ;;  %vm409_vm0 = vcmask 457728   ;;  %s1751_s25 = sld [smem:[#allocation3]]  ;;  %s2177_s28 = sld [smem:[#allocation3 + $0x1]] }
  0x3b   : > { %v2555_v10 = vpack.c.bf16 %v268_v8, %v267_v7  ;;  %v402_v11 = vmul.f32 %v267_v7, %v267_v7  ;;  %v403_v12 = vmul.f32 %v268_v8, %v268_v8  ;;  %v270_v13 = vld [vmem:[%s3016_s23 + $0x18] sm:$0xff]  ;;  %v404_v14 = vmul.f32 %v269_v9, %v269_v9  ;;  %v271_v15 = vld [vmem:[%s3016_s23 + $0x20] sm:$0xff]  ;;  %v272_v16 = vld [vmem:[%s3016_s23 + $0x28] sm:$0xff]  ;;  %s2178_s29 = sshll.u32 %s2956_s19, 4  ;;  %s266_s30 = scalar_lea.vmem [#allocation6], %s3013_s20 }
  0x3c   : > { %v2559_v17 = vpack.c.bf16 %v270_v13, %v269_v9  ;;  %v405_v18 = vmul.f32 %v270_v13, %v270_v13  ;;  %v274_v19 = vld [vmem:[%s3955_s1] sm:$0xff]  ;;  %v406_v22 = vmul.f32 %v271_v15, %v271_v15  ;;  %v407_v23 = vmul.f32 %v272_v16, %v272_v16  ;;  %v273_v27 = vld [vmem:[%s3016_s23 + $0x30] sm:$0xff]  ;;  %v277_v33 = vld [vmem:[%s3955_s1 + $0x18] sm:$0xff]  ;;  %s1969_s5 = sshll.u32 %s266_s30, 4  ;;  %s3910_s8 = scalar_lea.hbm %s3958_s4, %s2178_s29  ;;  %s3912_s5 = int_to_ptr.vmem [resolvable:$true] %s1969_s5 }
  0x3d   : > { %v338_v20 = vld [vmem:[%s3956_s2] sm:$0xff]  ;;  %2556 = vmatprep.subr.bf16.mxu0 %v2555_v10  ;;  %v2543_v21 = vpack.c.bf16 %v403_v12, %v402_v11  ;;  %2447 = vmatprep.mubr.msk.f32.mxu0 %vm409_vm0, %v274_v19  ;;  %v2563_v25 = vpack.c.bf16 %v272_v16, %v271_v15  ;;  %v408_v28 = vmul.f32 %v273_v27, %v273_v27  ;;  %v275_v29 = vld [vmem:[%s3955_s1 + $0x8] sm:$0xff]  ;;  %v276_v30 = vld [vmem:[%s3955_s1 + $0x10] sm:$0xff]  ;;  %s1957_s9 = scalar_lea.sflag [#allocation4], %s3013_s20  ;;  %s2840_s10 = scalar_lea.vmem %s3912_s5, 16 }
  0x3e   : > { %2558 = vmatpush3.bf16.msra.mxu0 %v2555_v10  ;;  %v2547_v24 = vpack.c.bf16 %v405_v18, %v404_v14  ;;  %2337 = vmatprep.mubr.msk.f32.mxu1 %vm409_vm0, %v338_v20  ;;  %v2551_v26 = vpack.c.bf16 %v407_v23, %v406_v22  ;;  %v339_v31 = vld [vmem:[%s3956_s2 + $0x8] sm:$0xff]  ;;  %v340_v32 = vld [vmem:[%s3956_s2 + $0x10] sm:$0xff]  ;;  %v278_v34 = vld [vmem:[%s3955_s1 + $0x20] sm:$0xff]  ;;  %p2841_p5 = scmp.ne.s32.totalorder %s3912_s5, %s2840_s10  ;;  %p3964_p10 = scmp.ne.s32.totalorder %s3961_s26, 0 }
  0x3f   : > { %2544 = vmatprep.subr.bf16.mxu1 %v2543_v21  ;;  %2560 = vmatprep.subr.bf16.mxu0 %v2559_v17  ;;  %v341_v35 = vld [vmem:[%s3956_s2 + $0x18] sm:$0xff]  ;;  %v342_v36 = vld [vmem:[%s3956_s2 + $0x20] sm:$0xff]  ;;  %v279_v37 = vld [vmem:[%s3955_s1 + $0x28] sm:$0xff]  ;;  %s2909_s19 = smov [#allocation6]  }
  0x40   : > { %2546 = vmatpush3.bf16.msra.mxu1 %v2543_v21  ;;  %v280_v38 = vld [vmem:[%s3955_s1 + $0x30] sm:$0xff]  ;;  %v343_v39 = vld [vmem:[%s3956_s2 + $0x28] sm:$0xff]  ;;  %v281_v41 = vld [vmem:[%s3955_s1 + $0x38] sm:$0xff]  ;;  %p2842_p11 = pnand %p2841_p5, %p3964_p10  ;;  %s2844_s11 = sshll.u32 %s2909_s19, 4  ;;  %s2845_s11 = int_to_ptr.vmem [resolvable:$false] %s2844_s11 }
  0x41   : > { %2548 = vmatprep.subr.bf16.mxu1 %v2547_v24  ;;  %v344_v40 = vld [vmem:[%s3956_s2 + $0x30] sm:$0xff]  ;;  %v282_v42 = vld [vmem:[%s3955_s1 + $0x40] sm:$0xff]  ;;  %v345_v43 = vld [vmem:[%s3956_s2 + $0x38] sm:$0xff]  ;;  %s2846_s12 = scalar_lea.vmem %s2845_s11, 32  ;;  %p2847_p13 = scmp.lt.s32.totalorder %s3912_s5, %s2845_s11 }
  0x42   : > { %2562 = vmatpush3.bf16.msra.mxu0 %v2559_v17  ;;  %v346_v44 = vld [vmem:[%s3956_s2 + $0x40] sm:$0xff]  ;;  %v283_v45 = vld [vmem:[%s3955_s1 + $0x48] sm:$0xff]  ;;  %v284_v46 = vld [vmem:[%s3955_s1 + $0x50] sm:$0xff]  ;;  %p2843_p12 = pneg %p2842_p11  ;;  %p2848_p0 = scmp.lt.s32.totalorder %s2846_s12, %s2840_s10 }
  0x43   : > { %2564 = vmatprep.subr.bf16.mxu0 %v2563_v25  ;;  %v347_v47 = vld [vmem:[%s3956_s2 + $0x48] sm:$0xff]  ;;  %v348_v48 = vld [vmem:[%s3956_s2 + $0x50] sm:$0xff]  ;;  %v285_v49 = vld [vmem:[%s3955_s1 + $0x58] sm:$0xff] }
  0x44   : > { %2550 = vmatpush3.bf16.msra.mxu1 %v2547_v24  ;;  %v286_v50 = vld [vmem:[%s3955_s1 + $0x60] sm:$0xff]  ;;  %v349_v51 = vld [vmem:[%s3956_s2 + $0x58] sm:$0xff]  ;;  %v287_v53 = vld [vmem:[%s3955_s1 + $0x68] sm:$0xff]  ;;  %p2849_p1 = por %p2848_p0, %p2847_p13 }
  0x45   : > { %2552 = vmatprep.subr.bf16.mxu1 %v2551_v26  ;;  %v350_v52 = vld [vmem:[%s3956_s2 + $0x60] sm:$0xff]  ;;  %v288_v54 = vld [vmem:[%s3955_s1 + $0x70] sm:$0xff]  ;;  %v351_v55 = vld [vmem:[%s3956_s2 + $0x68] sm:$0xff] }
  0x46   : > { %2566 = vmatpush3.bf16.msra.mxu0 %v2563_v25  ;;  %v352_v56 = vld [vmem:[%s3956_s2 + $0x70] sm:$0xff]  ;;  %v289_v57 = vld [vmem:[%s3955_s1 + $0x78] sm:$0xff]  ;;  %v290_v58 = vld [vmem:[%s3955_s1 + $0x80] sm:$0xff]  ;;  %p2850_p2 = pnand %p2849_p1, %p2843_p12 }
  0x47   : > { %2445 = vmatprep.subr.mxu0 %v273_v27  ;;  %v353_v59 = vld [vmem:[%s3956_s2 + $0x78] sm:$0xff]  ;;  %v354_v60 = vld [vmem:[%s3956_s2 + $0x80] sm:$0xff]  ;;  %v291_v61 = vld [vmem:[%s3955_s1 + $0x88] sm:$0xff] }
  0x48   : > { %2554 = vmatpush3.bf16.msra.mxu1 %v2551_v26  ;;  %v292_v62 = vld [vmem:[%s3955_s1 + $0x90] sm:$0xff]  ;;  %v355_v63 = vld [vmem:[%s3956_s2 + $0x88] sm:$0xff]  ;;  %v293_v1 = vld [vmem:[%s3955_s1 + $0x98] sm:$0xff] }
  0x49   : > { %2335 = vmatprep.subr.mxu1 %v408_v28  ;;  %v356_v0 = vld [vmem:[%s3956_s2 + $0x90] sm:$0xff]  ;;  %v294_v2 = vld [vmem:[%s3955_s1 + $0xa0] sm:$0xff]  ;;  %v357_v3 = vld [vmem:[%s3956_s2 + $0x98] sm:$0xff] }
  0x4a   : > { %2446 = vmatpush3.msra.mxu0 %v273_v27  ;;  %v358_v4 = vld [vmem:[%s3956_s2 + $0xa0] sm:$0xff]  ;;  %v295_v5 = vld [vmem:[%s3955_s1 + $0xa8] sm:$0xff]  ;;  %v296_v6 = vld [vmem:[%s3955_s1 + $0xb0] sm:$0xff] }
  0x4b   : > { %2448 = vmatmul.mubr.msk.f32.vlgmr.msra.gmra.mrb[0].mxu0 %vm409_vm0, %v275_v29  ;;  %v359_v7 = vld [vmem:[%s3956_s2 + $0xa8] sm:$0xff]  ;;  %v360_v8 = vld [vmem:[%s3956_s2 + $0xb0] sm:$0xff]  ;;  %v297_v9 = vld [vmem:[%s3955_s1 + $0xb8] sm:$0xff] }
  0x4c   : > { %2336 = vmatpush3.msra.mxu1 %v408_v28  ;;  %2450 = vmatprep.mubr.msk.f32.mxu0 %vm409_vm0, %v276_v30  ;;  %v298_v10 = vld [vmem:[%s3955_s1 + $0xc0] sm:$0xff]  ;;  %v361_v11 = vld [vmem:[%s3956_s2 + $0xb8] sm:$0xff]  ;;  %v299_v13 = vld [vmem:[%s3955_s1 + $0xc8] sm:$0xff] }
  0x4d   : > { %2338 = vmatmul.mubr.msk.f32.vlgmr.msra.gmra.mrb[0].mxu1 %vm409_vm0, %v339_v31  ;;  %v362_v12 = vld [vmem:[%s3956_s2 + $0xc0] sm:$0xff]  ;;  %v300_v14 = vld [vmem:[%s3955_s1 + $0xd0] sm:$0xff]  ;;  %v363_v15 = vld [vmem:[%s3956_s2 + $0xc8] sm:$0xff] }
  0x4e   : > { %2340 = vmatprep.mubr.msk.f32.mxu1 %vm409_vm0, %v340_v32  ;;  %v364_v16 = vld [vmem:[%s3956_s2 + $0xd0] sm:$0xff]  ;;  %v301_v17 = vld [vmem:[%s3955_s1 + $0xd8] sm:$0xff]  ;;  %v302_v18 = vld [vmem:[%s3955_s1 + $0xe0] sm:$0xff] }
  0x4f   : > { %2451 = vmatmul.mubr.msk.f32.gmra.mrb[2].mxu0 %vm409_vm0, %v277_v33  ;;  %v365_v19 = vld [vmem:[%s3956_s2 + $0xd8] sm:$0xff]  ;;  %v366_v20 = vld [vmem:[%s3956_s2 + $0xe0] sm:$0xff]  ;;  %v303_v21 = vld [vmem:[%s3955_s1 + $0xe8] sm:$0xff] }
  0x50   : > { %2453 = vmatprep.mubr.msk.f32.mxu0 %vm409_vm0, %v278_v34  ;;  %v304_v22 = vld [vmem:[%s3955_s1 + $0xf0] sm:$0xff]  ;;  %v367_v23 = vld [vmem:[%s3956_s2 + $0xe8] sm:$0xff]  ;;  %v305_v25 = vld [vmem:[%s3955_s1 + $0xf8] sm:$0xff] }
  0x51   : > { %2341 = vmatmul.mubr.msk.f32.gmra.mrb[2].mxu1 %vm409_vm0, %v341_v35  ;;  %v368_v24 = vld [vmem:[%s3956_s2 + $0xf0] sm:$0xff]  ;;  %v306_v26 = vld [vmem:[%s3955_s1 + $0x100] sm:$0xff]  ;;  %v369_v27 = vld [vmem:[%s3956_s2 + $0xf8] sm:$0xff] }
  0x52   : > { %2343 = vmatprep.mubr.msk.f32.mxu1 %vm409_vm0, %v342_v36  ;;  %v370_v28 = vld [vmem:[%s3956_s2 + $0x100] sm:$0xff]  ;;  %v307_v29 = vld [vmem:[%s3955_s1 + $0x108] sm:$0xff]  ;;  %v308_v30 = vld [vmem:[%s3955_s1 + $0x110] sm:$0xff] }
  0x53   : > { %2454 = vmatmul.mubr.msk.f32.gmra.mrb[4].mxu0 %vm409_vm0, %v279_v37  ;;  %v371_v31 = vld [vmem:[%s3956_s2 + $0x108] sm:$0xff]  ;;  %v372_v32 = vld [vmem:[%s3956_s2 + $0x110] sm:$0xff]  ;;  %v309_v33 = vld [vmem:[%s3955_s1 + $0x118] sm:$0xff] }
  0x54   : > { %2456 = vmatprep.mubr.msk.f32.mxu0 %vm409_vm0, %v280_v38  ;;  %v310_v34 = vld [vmem:[%s3955_s1 + $0x120] sm:$0xff]  ;;  %v373_v35 = vld [vmem:[%s3956_s2 + $0x118] sm:$0xff]  ;;  %v311_v37 = vld [vmem:[%s3955_s1 + $0x128] sm:$0xff] }
  0x55   : > { %2344 = vmatmul.mubr.msk.f32.gmra.mrb[4].mxu1 %vm409_vm0, %v343_v39  ;;  %v374_v36 = vld [vmem:[%s3956_s2 + $0x120] sm:$0xff]  ;;  %v312_v38 = vld [vmem:[%s3955_s1 + $0x130] sm:$0xff]  ;;  %v375_v39 = vld [vmem:[%s3956_s2 + $0x128] sm:$0xff] }
  0x56   : > { %2346 = vmatprep.mubr.msk.f32.mxu1 %vm409_vm0, %v344_v40  ;;  %v376_v40 = vld [vmem:[%s3956_s2 + $0x130] sm:$0xff] }
  0x57   : > { %2457 = vmatmul.mubr.msk.f32.gmra.mrb[6].mxu0 %vm409_vm0, %v281_v41  ;;  %v313_v41 = vld [vmem:[%s3955_s1 + $0x138] sm:$0xff] }
  0x58   : > { %2459 = vmatprep.mubr.msk.f32.mxu0 %vm409_vm0, %v282_v42  ;;  %v314_v42 = vld [vmem:[%s3955_s1 + $0x140] sm:$0xff] }
  0x59   : > { %2347 = vmatmul.mubr.msk.f32.gmra.mrb[6].mxu1 %vm409_vm0, %v345_v43  ;;  %v377_v43 = vld [vmem:[%s3956_s2 + $0x138] sm:$0xff] }
  0x5a   : > { %2349 = vmatprep.mubr.msk.f32.mxu1 %vm409_vm0, %v346_v44  ;;  %v378_v44 = vld [vmem:[%s3956_s2 + $0x140] sm:$0xff] }
  0x5b   : > { %2460 = vmatmul.mubr.msk.f32.gmra.mrb[8].mxu0 %vm409_vm0, %v283_v45  ;;  %v315_v45 = vld [vmem:[%s3955_s1 + $0x148] sm:$0xff] }
  0x5c   : > { %2462 = vmatprep.mubr.msk.f32.mxu0 %vm409_vm0, %v284_v46  ;;  %v316_v46 = vld [vmem:[%s3955_s1 + $0x150] sm:$0xff] }
  0x5d   : > { %2350 = vmatmul.mubr.msk.f32.gmra.mrb[8].mxu1 %vm409_vm0, %v347_v47  ;;  %v379_v47 = vld [vmem:[%s3956_s2 + $0x148] sm:$0xff] }
  0x5e   : > { %2352 = vmatprep.mubr.msk.f32.mxu1 %vm409_vm0, %v348_v48  ;;  %v380_v48 = vld [vmem:[%s3956_s2 + $0x150] sm:$0xff] }
  0x5f   : > { %2463 = vmatmul.mubr.msk.f32.gmra.mrb[10].mxu0 %vm409_vm0, %v285_v49  ;;  %v317_v49 = vld [vmem:[%s3955_s1 + $0x158] sm:$0xff] }
  0x60   : > { %2465 = vmatprep.mubr.msk.f32.mxu0 %vm409_vm0, %v286_v50  ;;  %v318_v50 = vld [vmem:[%s3955_s1 + $0x160] sm:$0xff] }
  0x61   : > { %2353 = vmatmul.mubr.msk.f32.gmra.mrb[10].mxu1 %vm409_vm0, %v349_v51  ;;  %v381_v51 = vld [vmem:[%s3956_s2 + $0x158] sm:$0xff] }
  0x62   : > { %2355 = vmatprep.mubr.msk.f32.mxu1 %vm409_vm0, %v350_v52  ;;  %v382_v52 = vld [vmem:[%s3956_s2 + $0x160] sm:$0xff] }
  0x63   : > { %2466 = vmatmul.mubr.msk.f32.gmra.mrb[12].mxu0 %vm409_vm0, %v287_v53  ;;  %v319_v53 = vld [vmem:[%s3955_s1 + $0x168] sm:$0xff] }
  0x64   : > { %2468 = vmatprep.mubr.msk.f32.mxu0 %vm409_vm0, %v288_v54  ;;  %v320_v54 = vld [vmem:[%s3955_s1 + $0x170] sm:$0xff] }
  0x65   : > { %2356 = vmatmul.mubr.msk.f32.gmra.mrb[12].mxu1 %vm409_vm0, %v351_v55  ;;  %v383_v55 = vld [vmem:[%s3956_s2 + $0x168] sm:$0xff] }
  0x66   : > { %2358 = vmatprep.mubr.msk.f32.mxu1 %vm409_vm0, %v352_v56  ;;  %v384_v56 = vld [vmem:[%s3956_s2 + $0x170] sm:$0xff] }
  0x67   : > { %2469 = vmatmul.mubr.msk.f32.gmra.mrb[14].mxu0 %vm409_vm0, %v289_v57  ;;  %v321_v57 = vld [vmem:[%s3955_s1 + $0x178] sm:$0xff] }
  0x68   : > { %2471 = vmatprep.mubr.msk.f32.mxu0 %vm409_vm0, %v290_v58  ;;  %v322_v58 = vld [vmem:[%s3955_s1 + $0x180] sm:$0xff] }
  0x69   : > { %2359 = vmatmul.mubr.msk.f32.gmra.mrb[14].mxu1 %vm409_vm0, %v353_v59  ;;  %v385_v59 = vld [vmem:[%s3956_s2 + $0x178] sm:$0xff] }
  0x6a   : > { %2361 = vmatprep.mubr.msk.f32.mxu1 %vm409_vm0, %v354_v60  ;;  %v386_v60 = vld [vmem:[%s3956_s2 + $0x180] sm:$0xff] }
  0x6b   : > { %2472 = vmatmul.mubr.msk.f32.gmra.mrb[16].mxu0 %vm409_vm0, %v291_v61  ;;  %v323_v61 = vld [vmem:[%s3955_s1 + $0x188] sm:$0xff] }
  0x6c   : > { %2474 = vmatprep.mubr.msk.f32.mxu0 %vm409_vm0, %v292_v62  ;;  %v324_v62 = vld [vmem:[%s3955_s1 + $0x190] sm:$0xff] }
  0x6d   : > { %2362 = vmatmul.mubr.msk.f32.gmra.mrb[16].mxu1 %vm409_vm0, %v355_v63  ;;  %v387_v63 = vld [vmem:[%s3956_s2 + $0x188] sm:$0xff] }
  0x6e   : > { %2364 = vmatprep.mubr.msk.f32.mxu1 %vm409_vm0, %v356_v0  ;;  %v388_v0 = vld [vmem:[%s3956_s2 + $0x190] sm:$0xff] }
  0x6f   : > { %2475 = vmatmul.mubr.msk.f32.gmra.mrb[18].mxu0 %vm409_vm0, %v293_v1  ;;  %v325_v1 = vld [vmem:[%s3955_s1 + $0x198] sm:$0xff] }
  0x70   : > { %2477 = vmatprep.mubr.msk.f32.mxu0 %vm409_vm0, %v294_v2  ;;  %v326_v2 = vld [vmem:[%s3955_s1 + $0x1a0] sm:$0xff] }
  0x71   : > { %2365 = vmatmul.mubr.msk.f32.gmra.mrb[18].mxu1 %vm409_vm0, %v357_v3  ;;  %v389_v3 = vld [vmem:[%s3956_s2 + $0x198] sm:$0xff] }
  0x72   : > { %2367 = vmatprep.mubr.msk.f32.mxu1 %vm409_vm0, %v358_v4  ;;  %v390_v4 = vld [vmem:[%s3956_s2 + $0x1a0] sm:$0xff] }
  0x73   : > { %2478 = vmatmul.mubr.msk.f32.gmra.mrb[20].mxu0 %vm409_vm0, %v295_v5  ;;  %v327_v5 = vld [vmem:[%s3955_s1 + $0x1a8] sm:$0xff] }
  0x74   : > { %2480 = vmatprep.mubr.msk.f32.mxu0 %vm409_vm0, %v296_v6  ;;  %v328_v6 = vld [vmem:[%s3955_s1 + $0x1b0] sm:$0xff] }
  0x75   : > { %2368 = vmatmul.mubr.msk.f32.gmra.mrb[20].mxu1 %vm409_vm0, %v359_v7  ;;  %v391_v7 = vld [vmem:[%s3956_s2 + $0x1a8] sm:$0xff] }
  0x76   : > { %2370 = vmatprep.mubr.msk.f32.mxu1 %vm409_vm0, %v360_v8  ;;  %v392_v8 = vld [vmem:[%s3956_s2 + $0x1b0] sm:$0xff] }
  0x77   : > { %2481 = vmatmul.mubr.msk.f32.gmra.mrb[22].mxu0 %vm409_vm0, %v297_v9  ;;  %v329_v9 = vld [vmem:[%s3955_s1 + $0x1b8] sm:$0xff] }
  0x78   : > { %2483 = vmatprep.mubr.msk.f32.mxu0 %vm409_vm0, %v298_v10  ;;  %v330_v10 = vld [vmem:[%s3955_s1 + $0x1c0] sm:$0xff] }
  0x79   : > { %2371 = vmatmul.mubr.msk.f32.gmra.mrb[22].mxu1 %vm409_vm0, %v361_v11  ;;  %v393_v11 = vld [vmem:[%s3956_s2 + $0x1b8] sm:$0xff] }
  0x7a   : > { %2373 = vmatprep.mubr.msk.f32.mxu1 %vm409_vm0, %v362_v12  ;;  %v394_v12 = vld [vmem:[%s3956_s2 + $0x1c0] sm:$0xff] }
  0x7b   : > { %2484 = vmatmul.mubr.msk.f32.gmra.mrb[24].mxu0 %vm409_vm0, %v299_v13  ;;  %v331_v13 = vld [vmem:[%s3955_s1 + $0x1c8] sm:$0xff] }
  0x7c   : > { %2486 = vmatprep.mubr.msk.f32.mxu0 %vm409_vm0, %v300_v14  ;;  %v332_v14 = vld [vmem:[%s3955_s1 + $0x1d0] sm:$0xff] }
  0x7d   : > { %2374 = vmatmul.mubr.msk.f32.gmra.mrb[24].mxu1 %vm409_vm0, %v363_v15  ;;  %v395_v15 = vld [vmem:[%s3956_s2 + $0x1c8] sm:$0xff] }
  0x7e   : > { %2376 = vmatprep.mubr.msk.f32.mxu1 %vm409_vm0, %v364_v16  ;;  %v396_v16 = vld [vmem:[%s3956_s2 + $0x1d0] sm:$0xff] }
  0x7f   : > { %2487 = vmatmul.mubr.msk.f32.gmra.mrb[26].mxu0 %vm409_vm0, %v301_v17  ;;  %v333_v17 = vld [vmem:[%s3955_s1 + $0x1d8] sm:$0xff] }
  0x80   : > { %2489 = vmatprep.mubr.msk.f32.mxu0 %vm409_vm0, %v302_v18  ;;  %v334_v18 = vld [vmem:[%s3955_s1 + $0x1e0] sm:$0xff] }
  0x81   : > { %2377 = vmatmul.mubr.msk.f32.gmra.mrb[26].mxu1 %vm409_vm0, %v365_v19  ;;  %v397_v19 = vld [vmem:[%s3956_s2 + $0x1d8] sm:$0xff] }
  0x82   : > { %2379 = vmatprep.mubr.msk.f32.mxu1 %vm409_vm0, %v366_v20  ;;  %v398_v20 = vld [vmem:[%s3956_s2 + $0x1e0] sm:$0xff] }
  0x83   : > { %2490 = vmatmul.mubr.msk.f32.gmra.mrb[28].mxu0 %vm409_vm0, %v303_v21  ;;  %v335_v21 = vld [vmem:[%s3955_s1 + $0x1e8] sm:$0xff] }
  0x84   : > { %2492 = vmatprep.mubr.msk.f32.mxu0 %vm409_vm0, %v304_v22  ;;  %v336_v22 = vld [vmem:[%s3955_s1 + $0x1f0] sm:$0xff] }
  0x85   : > { %2380 = vmatmul.mubr.msk.f32.gmra.mrb[28].mxu1 %vm409_vm0, %v367_v23  ;;  %v399_v23 = vld [vmem:[%s3956_s2 + $0x1e8] sm:$0xff] }
  0x86   : > { %2382 = vmatprep.mubr.msk.f32.mxu1 %vm409_vm0, %v368_v24  ;;  %v400_v24 = vld [vmem:[%s3956_s2 + $0x1f0] sm:$0xff] }
  0x87   : > { %2493 = vmatmul.mubr.msk.f32.gmra.mrb[30].mxu0 %vm409_vm0, %v305_v25  ;;  %v337_v25 = vld [vmem:[%s3955_s1 + $0x1f8] sm:$0xff] }
  0x88   : > { %2495 = vmatprep.mubr.msk.f32.mxu0 %vm409_vm0, %v306_v26  ;;  %v401_v26 = vld [vmem:[%s3956_s2 + $0x1f8] sm:$0xff] }
  0x89   : > { %2383 = vmatmul.mubr.msk.f32.gmra.mrb[30].mxu1 %vm409_vm0, %v369_v27 }
  0x8a   : > { %2385 = vmatprep.mubr.msk.f32.mxu1 %vm409_vm0, %v370_v28 }
  0x8b   : > { %2496 = vmatmul.mubr.msk.f32.gmra.mrb[32].mxu0 %vm409_vm0, %v307_v29 }
  0x8c   : > { %2498 = vmatprep.mubr.msk.f32.mxu0 %vm409_vm0, %v308_v30 }
  0x8d   : > { %2386 = vmatmul.mubr.msk.f32.gmra.mrb[32].mxu1 %vm409_vm0, %v371_v31 }
  0x8e   : > { %2388 = vmatprep.mubr.msk.f32.mxu1 %vm409_vm0, %v372_v32 }
  0x8f   : > { %2499 = vmatmul.mubr.msk.f32.gmra.mrb[34].mxu0 %vm409_vm0, %v309_v33 }
  0x90   : > { %2501 = vmatprep.mubr.msk.f32.mxu0 %vm409_vm0, %v310_v34 }
  0x91   : > { %2389 = vmatmul.mubr.msk.f32.gmra.mrb[34].mxu1 %vm409_vm0, %v373_v35 }
  0x92   : > { %2391 = vmatprep.mubr.msk.f32.mxu1 %vm409_vm0, %v374_v36 }
  0x93   : > { %2502 = vmatmul.mubr.msk.f32.gmra.mrb[36].mxu0 %vm409_vm0, %v311_v37 }
  0x94   : > { %2504 = vmatprep.mubr.msk.f32.mxu0 %vm409_vm0, %v312_v38 }
  0x95   : > { %2392 = vmatmul.mubr.msk.f32.gmra.mrb[36].mxu1 %vm409_vm0, %v375_v39 }
  0x96   : > { %2394 = vmatprep.mubr.msk.f32.mxu1 %vm409_vm0, %v376_v40 }
  0x97   : > { %2505 = vmatmul.mubr.msk.f32.gmra.mrb[38].mxu0 %vm409_vm0, %v313_v41 }
  0x98   : > { %2507 = vmatprep.mubr.msk.f32.mxu0 %vm409_vm0, %v314_v42 }
  0x99   : > { %2395 = vmatmul.mubr.msk.f32.gmra.mrb[38].mxu1 %vm409_vm0, %v377_v43 }
  0x9a   : > { %2397 = vmatprep.mubr.msk.f32.mxu1 %vm409_vm0, %v378_v44 }
  0x9b   : > { %2508 = vmatmul.mubr.msk.f32.gmra.mrb[40].mxu0 %vm409_vm0, %v315_v45 }
  0x9c   : > { %2510 = vmatprep.mubr.msk.f32.mxu0 %vm409_vm0, %v316_v46 }
  0x9d   : > { %2398 = vmatmul.mubr.msk.f32.gmra.mrb[40].mxu1 %vm409_vm0, %v379_v47 }
  0x9e   : > { %2400 = vmatprep.mubr.msk.f32.mxu1 %vm409_vm0, %v380_v48 }
  0x9f   : > { %2511 = vmatmul.mubr.msk.f32.gmra.mrb[42].mxu0 %vm409_vm0, %v317_v49 }
  0xa0   : > { %2513 = vmatprep.mubr.msk.f32.mxu0 %vm409_vm0, %v318_v50 }
  0xa1   : > { %2401 = vmatmul.mubr.msk.f32.gmra.mrb[42].mxu1 %vm409_vm0, %v381_v51 }
  0xa2   : > { %2403 = vmatprep.mubr.msk.f32.mxu1 %vm409_vm0, %v382_v52 }
  0xa3   : > { %2514 = vmatmul.mubr.msk.f32.gmra.mrb[44].mxu0 %vm409_vm0, %v319_v53 }
  0xa4   : > { %2516 = vmatprep.mubr.msk.f32.mxu0 %vm409_vm0, %v320_v54 }
  0xa5   : > { %2404 = vmatmul.mubr.msk.f32.gmra.mrb[44].mxu1 %vm409_vm0, %v383_v55 }
  0xa6   : > { %2406 = vmatprep.mubr.msk.f32.mxu1 %vm409_vm0, %v384_v56 }
  0xa7   : > { %2517 = vmatmul.mubr.msk.f32.gmra.mrb[46].mxu0 %vm409_vm0, %v321_v57 }
  0xa8   : > { %2519 = vmatprep.mubr.msk.f32.mxu0 %vm409_vm0, %v322_v58 }
  0xa9   : > { %2407 = vmatmul.mubr.msk.f32.gmra.mrb[46].mxu1 %vm409_vm0, %v385_v59 }
  0xaa   : > { %2409 = vmatprep.mubr.msk.f32.mxu1 %vm409_vm0, %v386_v60 }
  0xab   : > { %2520 = vmatmul.mubr.msk.f32.gmra.mrb[48].mxu0 %vm409_vm0, %v323_v61 }
  0xac   : > { %2522 = vmatprep.mubr.msk.f32.mxu0 %vm409_vm0, %v324_v62 }
  0xad   : > { %2410 = vmatmul.mubr.msk.f32.gmra.mrb[48].mxu1 %vm409_vm0, %v387_v63 }
  0xae   : > { %2412 = vmatprep.mubr.msk.f32.mxu1 %vm409_vm0, %v388_v0 }
  0xaf   : > { %2523 = vmatmul.mubr.msk.f32.gmra.mrb[50].mxu0 %vm409_vm0, %v325_v1 }
  0xb0   : > { %2525 = vmatprep.mubr.msk.f32.mxu0 %vm409_vm0, %v326_v2 }
  0xb1   : > { %2413 = vmatmul.mubr.msk.f32.gmra.mrb[50].mxu1 %vm409_vm0, %v389_v3 }
  0xb2   : > { %2415 = vmatprep.mubr.msk.f32.mxu1 %vm409_vm0, %v390_v4 }
  0xb3   : > { %2526 = vmatmul.mubr.msk.f32.gmra.mrb[52].mxu0 %vm409_vm0, %v327_v5 }
  0xb4   : > { %2528 = vmatprep.mubr.msk.f32.mxu0 %vm409_vm0, %v328_v6 }
  0xb5   : > { %2416 = vmatmul.mubr.msk.f32.gmra.mrb[52].mxu1 %vm409_vm0, %v391_v7 }
  0xb6   : > { %2418 = vmatprep.mubr.msk.f32.mxu1 %vm409_vm0, %v392_v8 }
  0xb7   : > { %2529 = vmatmul.mubr.msk.f32.gmra.mrb[54].mxu0 %vm409_vm0, %v329_v9 }
  0xb8   : > { %2531 = vmatprep.mubr.msk.f32.mxu0 %vm409_vm0, %v330_v10 }
  0xb9   : > { %2419 = vmatmul.mubr.msk.f32.gmra.mrb[54].mxu1 %vm409_vm0, %v393_v11 }
  0xba   : > { %2421 = vmatprep.mubr.msk.f32.mxu1 %vm409_vm0, %v394_v12 }
  0xbb   : > { %2532 = vmatmul.mubr.msk.f32.gmra.mrb[56].mxu0 %vm409_vm0, %v331_v13 }
  0xbc   : > { %2534 = vmatprep.mubr.msk.f32.mxu0 %vm409_vm0, %v332_v14 }
  0xbd   : > { %2422 = vmatmul.mubr.msk.f32.gmra.mrb[56].mxu1 %vm409_vm0, %v395_v15 }
  0xbe   : > { %2424 = vmatprep.mubr.msk.f32.mxu1 %vm409_vm0, %v396_v16 }
  0xbf   : > { %2535 = vmatmul.mubr.msk.f32.gmra.mrb[58].mxu0 %vm409_vm0, %v333_v17 }
  0xc0   : > { %2537 = vmatprep.mubr.msk.f32.mxu0 %vm409_vm0, %v334_v18 }
  0xc1   : > { %2425 = vmatmul.mubr.msk.f32.gmra.mrb[58].mxu1 %vm409_vm0, %v397_v19 }
  0xc2   : > { %2427 = vmatprep.mubr.msk.f32.mxu1 %vm409_vm0, %v398_v20 }
  0xc3   : > { %2538 = vmatmul.mubr.msk.f32.gmra.mrb[60].mxu0 %vm409_vm0, %v335_v21 }
  0xc4   : > { %2540 = vmatprep.mubr.msk.f32.mxu0 %vm409_vm0, %v336_v22 }
  0xc5   : > { %2428 = vmatmul.mubr.msk.f32.gmra.mrb[60].mxu1 %vm409_vm0, %v399_v23 }
  0xc6   : > { %2430 = vmatprep.mubr.msk.f32.mxu1 %vm409_vm0, %v400_v24 }
  0xc7   : > { %2541 = vmatmul.mubr.msk.f32.gmra.mrb[62].mxu0 %vm409_vm0, %v337_v25 }
  0xc9   : > { %2431 = vmatmul.mubr.msk.f32.gmra.mrb[62].mxu1 %vm409_vm0, %v401_v26 }
 0x11e   : > { %v2449_v27 = vpop.f32.mrb[0].mxu0 }
 0x11f   : > { %v1245_v28 = vpop.f32.mrb[1].mxu0 }
 0x120   : > { %v2339_v29 = vpop.f32.mrb[0].mxu1 }
 0x121   : > { %v3541_v30 = vadd.f32 %v2449_v27, %v2339_v29  ;;  %v668_v31 = vpop.f32.mrb[1].mxu1 }
 0x122   : > { %v3543_v32 = vadd.f32 %v1245_v28, %v668_v31  ;;  %v2452_v33 = vpop.f32.mrb[2].mxu0 }
 0x123   : > { %v1255_v34 = vpop.f32.mrb[3].mxu0 }
 0x124   : > { %v2342_v35 = vpop.f32.mrb[2].mxu1 }
 0x125   : > { %v3545_v36 = vadd.f32 %v2452_v33, %v2342_v35  ;;  %v678_v37 = vpop.f32.mrb[3].mxu1 }
 0x126   : > { %v3547_v38 = vadd.f32 %v1255_v34, %v678_v37  ;;  %v2455_v39 = vpop.f32.mrb[4].mxu0 }
 0x127   : > { %v1265_v40 = vpop.f32.mrb[5].mxu0 }
 0x128   : > { %v2345_v41 = vpop.f32.mrb[4].mxu1 }
 0x129   : > { %v3549_v42 = vadd.f32 %v2455_v39, %v2345_v41  ;;  %v688_v43 = vpop.f32.mrb[5].mxu1 }
 0x12a   : > { %v3551_v44 = vadd.f32 %v1265_v40, %v688_v43  ;;  %v2458_v45 = vpop.f32.mrb[6].mxu0 }
 0x12b   : > { %v1565_v46 = vmax.f32 %v3541_v30, %v3549_v42  ;;  %v1275_v47 = vpop.f32.mrb[7].mxu0 }
 0x12c   : > { %v1564_v48 = vmax.f32 %v3543_v32, %v3551_v44  ;;  %v2348_v49 = vpop.f32.mrb[6].mxu1 }
 0x12d   : > { %v3557_v50 = vadd.f32 %v2458_v45, %v2348_v49  ;;  %v698_v51 = vpop.f32.mrb[7].mxu1 }
 0x12e   : > { %v3559_v52 = vadd.f32 %v1275_v47, %v698_v51  ;;  %v2461_v53 = vpop.f32.mrb[8].mxu0 }
 0x12f   : > { %v1567_v54 = vmax.f32 %v3545_v36, %v3557_v50  ;;  %v1285_v55 = vpop.f32.mrb[9].mxu0 }
 0x130   : > { %v1566_v56 = vmax.f32 %v3547_v38, %v3559_v52  ;;  %v2351_v57 = vpop.f32.mrb[8].mxu1 }
 0x131   : > { %v3565_v58 = vadd.f32 %v2461_v53, %v2351_v57  ;;  %v708_v59 = vpop.f32.mrb[9].mxu1 }
 0x132   : > { %v3567_v60 = vadd.f32 %v1285_v55, %v708_v59  ;;  %v2464_v61 = vpop.f32.mrb[10].mxu0 }
 0x133   : > { %v1569_v62 = vmax.f32 %v1565_v46, %v3565_v58  ;;  %v1295_v63 = vpop.f32.mrb[11].mxu0 }
 0x134   : > { %v1568_v0 = vmax.f32 %v1564_v48, %v3567_v60  ;;  %v2354_v1 = vpop.f32.mrb[10].mxu1 }
 0x135   : > { %v3571_v2 = vadd.f32 %v2464_v61, %v2354_v1  ;;  %v718_v3 = vpop.f32.mrb[11].mxu1 }
 0x136   : > { %v3573_v4 = vadd.f32 %v1295_v63, %v718_v3  ;;  %v2467_v5 = vpop.f32.mrb[12].mxu0 }
 0x137   : > { %v1571_v6 = vmax.f32 %v1567_v54, %v3571_v2  ;;  %v1305_v7 = vpop.f32.mrb[13].mxu0 }
 0x138   : > { %v1570_v8 = vmax.f32 %v1566_v56, %v3573_v4  ;;  %v2357_v9 = vpop.f32.mrb[12].mxu1 }
 0x139   : > { %v3577_v10 = vadd.f32 %v2467_v5, %v2357_v9  ;;  %v728_v11 = vpop.f32.mrb[13].mxu1 }
 0x13a   : > { %v3579_v12 = vadd.f32 %v1305_v7, %v728_v11  ;;  %v2470_v13 = vpop.f32.mrb[14].mxu0 }
 0x13b   : > { %v1573_v14 = vmax.f32 %v1569_v62, %v3577_v10  ;;  %v1315_v15 = vpop.f32.mrb[15].mxu0 }
 0x13c   : > { %v1572_v16 = vmax.f32 %v1568_v0, %v3579_v12  ;;  %v2360_v17 = vpop.f32.mrb[14].mxu1 }
 0x13d   : > { %v3583_v18 = vadd.f32 %v2470_v13, %v2360_v17  ;;  %v738_v19 = vpop.f32.mrb[15].mxu1 }
 0x13e   : > { %v1576_v20 = vmax.f32 %v1572_v16, %v1573_v14  ;;  %v3585_v21 = vadd.f32 %v1315_v15, %v738_v19  ;;  %v2473_v22 = vpop.f32.mrb[16].mxu0 }
 0x13f   : > { %v1575_v23 = vmax.f32 %v1571_v6, %v3583_v18  ;;  %v1325_v24 = vpop.f32.mrb[17].mxu0 }
 0x140   : > { %v1574_v25 = vmax.f32 %v1570_v8, %v3585_v21  ;;  %v2363_v26 = vpop.f32.mrb[16].mxu1 }
 0x141   : > { %v3589_v27 = vadd.f32 %v2473_v22, %v2363_v26  ;;  %v748_v28 = vpop.f32.mrb[17].mxu1 }
 0x142   : > { %v1577_v29 = vmax.f32 %v1574_v25, %v1575_v23  ;;  %v3591_v31 = vadd.f32 %v1325_v24, %v748_v28  ;;  %v2476_v33 = vpop.f32.mrb[18].mxu0 }
 0x143   : > { %v1335_v34 = vpop.f32.mrb[19].mxu0 }
 0x144   : > { %v1578_v35 = vmax.f32 %v1576_v20, %v1577_v29  ;;  %v2366_v37 = vpop.f32.mrb[18].mxu1 }
 0x145   : > { %v3593_v39 = vadd.f32 %v2476_v33, %v2366_v37  ;;  %v758_v40 = vpop.f32.mrb[19].mxu1 }
 0x146   : > { %v1579_v41 = vrot.slane %v1578_v35, 4  ;;  %v3595_v43 = vadd.f32 %v1335_v34, %v758_v40  ;;  %v2479_v45 = vpop.f32.mrb[20].mxu0 }
 0x147   : > { %v1345_v46 = vpop.f32.mrb[21].mxu0 }
 0x148   : > { %v1580_v47 = vmax.f32 %v1578_v35, %v1579_v41  ;;  %v2369_v48 = vpop.f32.mrb[20].mxu1 }
 0x149   : > { %v3597_v49 = vadd.f32 %v2479_v45, %v2369_v48  ;;  %v768_v51 = vpop.f32.mrb[21].mxu1 }
 0x14a   : > { %v1581_v53 = vrot.slane %v1580_v47, 2  ;;  %v3599_v54 = vadd.f32 %v1345_v46, %v768_v51  ;;  %v2482_v55 = vpop.f32.mrb[22].mxu0 }
 0x14b   : > { %v1755_v56 = vmax.f32 %v3589_v27, %v3597_v49  ;;  %v1355_v57 = vpop.f32.mrb[23].mxu0 }
 0x14c   : > { %v1582_v59 = vmax.f32 %v1580_v47, %v1581_v53  ;;  %v1754_v61 = vmax.f32 %v3591_v31, %v3599_v54  ;;  %v2372_v62 = vpop.f32.mrb[22].mxu1 }
 0x14d   : > { %v3605_v63 = vadd.f32 %v2482_v55, %v2372_v62  ;;  %v778_v0 = vpop.f32.mrb[23].mxu1 }
 0x14e   : > { %v1583_v1 = vrot.slane %v1582_v59, 1  ;;  %v3607_v3 = vadd.f32 %v1355_v57, %v778_v0  ;;  %v2485_v5 = vpop.f32.mrb[24].mxu0 }
 0x14f   : > { %v1757_v6 = vmax.f32 %v3593_v39, %v3605_v63  ;;  %v1365_v7 = vpop.f32.mrb[25].mxu0 }
 0x150   : > { %v3611_v8 = vmax.f32 %v1582_v59, %v1583_v1  ;;  %v1756_v9 = vmax.f32 %v3595_v43, %v3607_v3  ;;  %v2375_v11 = vpop.f32.mrb[24].mxu1 }
 0x151   : > { %v3615_v13 = vadd.f32 %v2485_v5, %v2375_v11  ;;  %v788_v14 = vpop.f32.mrb[25].mxu1 }
 0x152   : > { %v1585_v15 = vsub.f32 %v3543_v32, %v3611_v8  ;;  %v1586_v16 = vsub.f32 %v3541_v30, %v3611_v8  ;;  %v2488_v17 = vpop.f32.mrb[26].mxu0  ;;  %v1587_v19 = vsub.f32 %v3547_v38, %v3611_v8  ;;  %v1588_v23 = vsub.f32 %v3545_v36, %v3611_v8 }
 0x153   : > { %v1375_v20 = vpop.f32.mrb[27].mxu0  ;;  %v1759_v28 = vmax.f32 %v1755_v56, %v3615_v13  ;;  %v1589_v32 = vsub.f32 %v3551_v44, %v3611_v8  ;;  %v3628_v33 = vadd.f32 %v1365_v7, %v788_v14  ;;  %v1590_v30 = vsub.f32 %v3549_v42, %v3611_v8 }
 0x154   : > { %v2378_v22 = vpop.f32.mrb[26].mxu1  ;;  %v1601_v25 = vmul.f32 1.442695, %v1585_v15  ;;  %v1603_v26 = vmul.f32 1.442695, %v1586_v16  ;;  %v1591_v36 = vsub.f32 %v3559_v52, %v3611_v8  ;;  %v1592_v41 = vsub.f32 %v3557_v50, %v3611_v8 }
 0x155   : > { %v798_v24 = vpop.f32.mrb[27].mxu1  ;;  %v1605_v29 = vmul.f32 1.442695, %v1587_v19  ;;  %v1607_v38 = vmul.f32 1.442695, %v1588_v23  ;;  %v1758_v35 = vmax.f32 %v1754_v61, %v3628_v33  ;;  %v3635_v37 = vadd.f32 %v2488_v17, %v2378_v22 }
 0x156   : > { %2683 = vpow2.f32 %v1601_v25  ;;  %v1609_v34 = vmul.f32 1.442695, %v1589_v32  ;;  %v2491_v40 = vpop.f32.mrb[28].mxu0  ;;  %v3639_v45 = vadd.f32 %v1375_v20, %v798_v24  ;;  %v1611_v48 = vmul.f32 1.442695, %v1590_v30 }
 0x157   : > { %2685 = vpow2.f32 %v1603_v26  ;;  %v1385_v42 = vpop.f32.mrb[29].mxu0  ;;  %v1761_v52 = vmax.f32 %v1757_v6, %v3635_v37  ;;  %v1593_v56 = vsub.f32 %v3567_v60, %v3611_v8  ;;  %v1613_v0 = vmul.f32 1.442695, %v1591_v36 }
 0x158   : > { %2687 = vpow2.f32 %v1605_v29  ;;  %v2381_v44 = vpop.f32.mrb[28].mxu1  ;;  %v1760_v57 = vmax.f32 %v1756_v9, %v3639_v45  ;;  %v1594_v7 = vsub.f32 %v3565_v58, %v3611_v8  ;;  %v1615_v11 = vmul.f32 1.442695, %v1592_v41 }
 0x159   : > { %v3641_v46 = vadd.f32 %v2491_v40, %v2381_v44  ;;  %v808_v47 = vpop.f32.mrb[29].mxu1  ;;  %2689 = vpow2.f32 %v1607_v38  ;;  %v1595_v58 = vsub.f32 %v3573_v4, %v3611_v8  ;;  %v1617_v25 = vmul.f32 1.442695, %v1593_v56 }
 0x15a   : > { %v3644_v51 = vadd.f32 %v1385_v42, %v808_v47  ;;  %v2494_v53 = vpop.f32.mrb[30].mxu0  ;;  %2691 = vpow2.f32 %v1609_v34  ;;  %v1596_v32 = vsub.f32 %v3571_v2, %v3611_v8  ;;  %v1619_v36 = vmul.f32 1.442695, %v1594_v7 }
 0x15b   : > { %v1763_v50 = vmax.f32 %v1759_v28, %v3641_v46  ;;  %v1395_v61 = vpop.f32.mrb[31].mxu0  ;;  %2693 = vpow2.f32 %v1611_v48  ;;  %v1597_v47 = vsub.f32 %v3579_v12, %v3611_v8  ;;  %v1621_v48 = vmul.f32 1.442695, %v1595_v58 }
 0x15c   : > { %v2384_v55 = vpop.f32.mrb[30].mxu1  ;;  %v1762_v1 = vmax.f32 %v1758_v35, %v3644_v51  ;;  %2695 = vpow2.f32 %v1613_v0 }
 0x15d   : > { %v3650_v59 = vadd.f32 %v2494_v53, %v2384_v55  ;;  %v818_v62 = vpop.f32.mrb[31].mxu1  ;;  %2697 = vpow2.f32 %v1615_v11  ;;  %v1598_v53 = vsub.f32 %v3577_v10, %v3611_v8 }
 0x15e   : > { %v3653_v5 = vadd.f32 %v1395_v61, %v818_v62  ;;  %v2497_v6 = vpop.f32.mrb[32].mxu0  ;;  %v1766_v15 = vmax.f32 %v1762_v1, %v1763_v50  ;;  %2699 = vpow2.f32 %v1617_v25  ;;  %v1623_v50 = vmul.f32 1.442695, %v1596_v32 }
 0x15f   : > { %v1765_v60 = vmax.f32 %v1761_v52, %v3650_v59  ;;  %v1405_v14 = vpop.f32.mrb[33].mxu0  ;;  %2701 = vpow2.f32 %v1619_v36  ;;  %v1599_v1 = vsub.f32 %v3585_v21, %v3611_v8 }
 0x160   : > { %v2387_v9 = vpop.f32.mrb[32].mxu1  ;;  %v1764_v16 = vmax.f32 %v1760_v57, %v3653_v5  ;;  %v2684_v20 = vpop.eup %2683  ;;  %2703 = vpow2.f32 %v1621_v48 }
 0x161   : > { %v3659_v17 = vadd.f32 %v2497_v6, %v2387_v9  ;;  %v828_v19 = vpop.f32.mrb[33].mxu1  ;;  %v2686_v24 = vpop.eup %2685  ;;  %2705 = vpow2.f32 %v1623_v50 }
 0x162   : > { %v3661_v22 = vadd.f32 %v1405_v14, %v828_v19  ;;  %v2500_v23 = vpop.f32.mrb[34].mxu0  ;;  %v1767_v26 = vmax.f32 %v1764_v16, %v1765_v60  ;;  %v1633_v29 = vadd.f32 %v2686_v24, %v2684_v20  ;;  %v2688_v38 = vpop.eup %2687  ;;  %v1625_v60 = vmul.f32 1.442695, %v1597_v47 }
 0x163   : > { %v1415_v28 = vpop.f32.mrb[35].mxu0  ;;  %v2690_v42 = vpop.eup %2689 }
 0x164   : > { %v2390_v30 = vpop.f32.mrb[34].mxu1  ;;  %v1768_v34 = vmax.f32 %v1766_v15, %v1767_v26  ;;  %v1634_v44 = vadd.f32 %v2688_v38, %v1633_v29  ;;  %v2692_v57 = vpop.eup %2691  ;;  %v1600_v15 = vsub.f32 %v3583_v18, %v3611_v8  ;;  %2707 = vpow2.f32 %v1625_v60 }
 0x165   : > { %v3667_v35 = vadd.f32 %v2500_v23, %v2390_v30  ;;  %v838_v40 = vpop.f32.mrb[35].mxu1  ;;  %v2694_v11 = vpop.eup %2693  ;;  %v1627_v23 = vmul.f32 1.442695, %v1598_v53  ;;  %v1629_v30 = vmul.f32 1.442695, %v1599_v1 }
 0x166   : > { %v3669_v41 = vadd.f32 %v1415_v28, %v838_v40  ;;  %v2503_v4 = vpop.f32.mrb[36].mxu0  ;;  %v1769_v2 = vrot.slane %v1768_v34, 4  ;;  %v1635_v55 = vadd.f32 %v2690_v42, %v1634_v44  ;;  %v2696_v20 = vpop.eup %2695  ;;  %v1631_v42 = vmul.f32 1.442695, %v1600_v15 }
 0x167   : > { %v1425_v52 = vpop.f32.mrb[37].mxu0  ;;  %v2698_v29 = vpop.eup %2697  ;;  %2709 = vpow2.f32 %v1627_v23 }
 0x168   : > { %v2393_v56 = vpop.f32.mrb[36].mxu1  ;;  %v1770_v61 = vmax.f32 %v1768_v34, %v1769_v2  ;;  %v1636_v12 = vadd.f32 %v2692_v57, %v1635_v55  ;;  %2711 = vpow2.f32 %v1629_v30 }
 0x169   : > { %v3675_v62 = vadd.f32 %v2503_v4, %v2393_v56  ;;  %v848_v0 = vpop.f32.mrb[37].mxu1  ;;  %v2700_v4 = vpop.eup %2699  ;;  %2713 = vpow2.f32 %v1631_v42 }
 0x16a   : > { %v3679_v6 = vadd.f32 %v1425_v52, %v848_v0  ;;  %v2506_v7 = vpop.f32.mrb[38].mxu0  ;;  %v1771_v10 = vrot.slane %v1770_v61, 2  ;;  %v1637_v16 = vadd.f32 %v2694_v11, %v1636_v12  ;;  %v2702_v56 = vpop.eup %2701 }
 0x16b   : > { %v1658_v9 = vmax.f32 %v3659_v17, %v3675_v62  ;;  %v1435_v14 = vpop.f32.mrb[39].mxu0 }
 0x16c   : > { %v1657_v19 = vmax.f32 %v3661_v22, %v3679_v6  ;;  %v2396_v21 = vpop.f32.mrb[38].mxu1  ;;  %v1772_v24 = vmax.f32 %v1770_v61, %v1771_v10  ;;  %v1638_v26 = vadd.f32 %v2696_v20, %v1637_v16 }
 0x16d   : > { %v3687_v58 = vadd.f32 %v2506_v7, %v2396_v21  ;;  %v858_v25 = vpop.f32.mrb[39].mxu1  ;;  %v2704_v7 = vpop.eup %2703 }
 0x16e   : > { %v3689_v28 = vadd.f32 %v1435_v14, %v858_v25  ;;  %v2509_v32 = vpop.f32.mrb[40].mxu0  ;;  %v1773_v18 = vrot.slane %v1772_v24, 1  ;;  %v1639_v34 = vadd.f32 %v2698_v29, %v1638_v26  ;;  %v2706_v15 = vpop.eup %2705 }
 0x16f   : > { %v1660_v38 = vmax.f32 %v3667_v35, %v3687_v58  ;;  %v1445_v36 = vpop.f32.mrb[41].mxu0 }
 0x170   : > { %v1659_v40 = vmax.f32 %v3669_v41, %v3689_v28  ;;  %v2399_v44 = vpop.f32.mrb[40].mxu1  ;;  %v3695_v47 = vmax.f32 %v1772_v24, %v1773_v18  ;;  %v1640_v52 = vadd.f32 %v2700_v4, %v1639_v34  ;;  %v2708_v24 = vpop.eup %2707 }
 0x171   : > { %v3697_v48 = vadd.f32 %v2509_v32, %v2399_v44  ;;  %v868_v2 = vpop.f32.mrb[41].mxu1  ;;  %v2710_v29 = vpop.eup %2709 }
 0x172   : > { %v3699_v53 = vadd.f32 %v1445_v36, %v868_v2  ;;  %v2512_v55 = vpop.f32.mrb[42].mxu0  ;;  %v1775_v57 = vsub.f32 %v3591_v31, %v3695_v47  ;;  %v1776_v50 = vsub.f32 %v3589_v27, %v3695_v47  ;;  %v1641_v0 = vadd.f32 %v2702_v56, %v1640_v52  ;;  %v2712_v4 = vpop.eup %2711 }
 0x173   : > { %v1455_v61 = vpop.f32.mrb[43].mxu0  ;;  %v1777_v1 = vsub.f32 %v3595_v43, %v3695_v47  ;;  %v1778_v10 = vsub.f32 %v3593_v39, %v3695_v47  ;;  %v1779_v27 = vsub.f32 %v3599_v54, %v3695_v47  ;;  %v1780_v43 = vsub.f32 %v3597_v49, %v3695_v47 }
 0x174   : > { %v2402_v12 = vpop.f32.mrb[42].mxu1  ;;  %v1642_v60 = vadd.f32 %v2704_v7, %v1641_v0  ;;  %v1791_v16 = vmul.f32 1.442695, %v1775_v57  ;;  %v1793_v31 = vmul.f32 1.442695, %v1776_v50  ;;  %v1781_v30 = vsub.f32 %v3607_v3, %v3695_v47  ;;  %v2714_v0 = vpop.eup %2713 }
 0x175   : > { %v878_v11 = vpop.f32.mrb[43].mxu1  ;;  %v1795_v23 = vmul.f32 1.442695, %v1777_v1  ;;  %v1797_v26 = vmul.f32 1.442695, %v1778_v10  ;;  %v1782_v36 = vsub.f32 %v3605_v63, %v3695_v47  ;;  %v1783_v49 = vsub.f32 %v3628_v33, %v3695_v47 }
 0x176   : > { %v2515_v14 = vpop.f32.mrb[44].mxu0  ;;  %v1643_v20 = vadd.f32 %v2706_v15, %v1642_v60  ;;  %2715 = vpow2.f32 %v1791_v16  ;;  %v1799_v54 = vmul.f32 1.442695, %v1779_v27  ;;  %v1801_v42 = vmul.f32 1.442695, %v1780_v43 }
 0x177   : > { %v1465_v21 = vpop.f32.mrb[45].mxu0  ;;  %2717 = vpow2.f32 %v1793_v31  ;;  %v1662_v2 = vmax.f32 %v1658_v9, %v3697_v48  ;;  %v1661_v3 = vmax.f32 %v1657_v19, %v3699_v53  ;;  %v3727_v56 = vadd.f32 %v2512_v55, %v2402_v12 }
 0x178   : > { %v1644_v25 = vadd.f32 %v2708_v24, %v1643_v20  ;;  %v2405_v32 = vpop.f32.mrb[44].mxu1  ;;  %2719 = vpow2.f32 %v1795_v23  ;;  %v3729_v57 = vadd.f32 %v1455_v61, %v878_v11  ;;  %v1803_v1 = vmul.f32 1.442695, %v1781_v30 }
 0x179   : > { %v888_v34 = vpop.f32.mrb[45].mxu1  ;;  %2721 = vpow2.f32 %v1797_v26  ;;  %v3731_v7 = vadd.f32 %v2515_v14, %v2405_v32  ;;  %v1664_v19 = vmax.f32 %v1660_v38, %v3727_v56  ;;  %v1784_v12 = vsub.f32 %v3615_v13, %v3695_v47 }
 0x17a   : > { %v2518_v39 = vpop.f32.mrb[46].mxu0  ;;  %v1645_v18 = vadd.f32 %v2710_v29, %v1644_v25  ;;  %v3733_v60 = vadd.f32 %v1465_v21, %v888_v34  ;;  %2723 = vpow2.f32 %v1799_v54  ;;  %v1663_v55 = vmax.f32 %v1659_v40, %v3729_v57 }
 0x17b   : > { %v1475_v44 = vpop.f32.mrb[47].mxu0  ;;  %v1666_v11 = vmax.f32 %v1662_v2, %v3731_v7  ;;  %2725 = vpow2.f32 %v1801_v42  ;;  %v1805_v21 = vmul.f32 1.442695, %v1782_v36  ;;  %v1785_v26 = vsub.f32 %v3639_v45, %v3695_v47 }
 0x17c   : > { %v2408_v63 = vpop.f32.mrb[46].mxu1  ;;  %v1646_v52 = vadd.f32 %v2712_v4, %v1645_v18  ;;  %v1665_v14 = vmax.f32 %v1661_v3, %v3733_v60  ;;  %2727 = vpow2.f32 %v1803_v1  ;;  %v1807_v32 = vmul.f32 1.442695, %v1783_v49 }
 0x17d   : > { %v898_v50 = vpop.f32.mrb[47].mxu1  ;;  %v3735_v9 = vadd.f32 %v2518_v39, %v2408_v63  ;;  %v1786_v34 = vsub.f32 %v3635_v37, %v3695_v47  ;;  %2729 = vpow2.f32 %v1805_v21  ;;  %v1787_v49 = vsub.f32 %v3644_v51, %v3695_v47 }
 0x17e   : > { %v2521_v33 = vpop.f32.mrb[48].mxu0  ;;  %v3737_v15 = vadd.f32 %v2714_v0, %v1646_v52  ;;  %v3751_v16 = vadd.f32 %v1475_v44, %v898_v50  ;;  %v1669_v40 = vmax.f32 %v1665_v14, %v1666_v11  ;;  %v1809_v44 = vmul.f32 1.442695, %v1784_v12 }
 0x17f   : > { %v1485_v10 = vpop.f32.mrb[49].mxu0  ;;  %v1668_v38 = vmax.f32 %v1664_v19, %v3735_v9  ;;  %2731 = vpow2.f32 %v1807_v32  ;;  %v1811_v52 = vmul.f32 1.442695, %v1785_v26  ;;  %v1788_v19 = vsub.f32 %v3641_v46, %v3695_v47 }
 0x180   : > { %v2411_v61 = vpop.f32.mrb[48].mxu1  ;;  %v2716_v23 = vpop.eup %2715  ;;  %v1667_v24 = vmax.f32 %v1663_v55, %v3751_v16  ;;  %2733 = vpow2.f32 %v1809_v44  ;;  %v1813_v55 = vmul.f32 1.442695, %v1786_v34  ;;  %v1790_v32 = vsub.f32 %v3650_v59, %v3695_v47 }
 0x181   : > { %v908_v31 = vpop.f32.mrb[49].mxu1  ;;  %v3754_v20 = vadd.f32 %v2521_v33, %v2411_v61  ;;  %v2718_v25 = vpop.eup %2717  ;;  %2735 = vpow2.f32 %v1811_v52 }
 0x182   : > { %v2524_v27 = vpop.f32.mrb[50].mxu0  ;;  %v3757_v43 = vadd.f32 %v1485_v10, %v908_v31  ;;  %v1823_v29 = vadd.f32 %v2718_v25, %v2716_v23  ;;  %v1670_v30 = vmax.f32 %v1667_v24, %v1668_v38  ;;  %v2720_v54 = vpop.eup %2719  ;;  %v1789_v38 = vsub.f32 %v3653_v5, %v3695_v47 }
 0x183   : > { %v1495_v13 = vpop.f32.mrb[51].mxu0  ;;  %v2722_v63 = vpop.eup %2721  ;;  %2737 = vpow2.f32 %v1813_v55 }
 0x184   : > { %v2414_v39 = vpop.f32.mrb[50].mxu1  ;;  %v1824_v2 = vadd.f32 %v2720_v54, %v1823_v29  ;;  %v1671_v3 = vmax.f32 %v1669_v40, %v1670_v30  ;;  %v2724_v10 = vpop.eup %2723 }
 0x185   : > { %v3761_v18 = vadd.f32 %v2524_v27, %v2414_v39  ;;  %v918_v36 = vpop.f32.mrb[51].mxu1  ;;  %v2726_v21 = vpop.eup %2725  ;;  %v1815_v27 = vmul.f32 1.442695, %v1787_v49  ;;  %v1817_v39 = vmul.f32 1.442695, %v1788_v19 }
 0x186   : > { %v3765_v4 = vadd.f32 %v1495_v13, %v918_v36  ;;  %v2527_v42 = vpop.f32.mrb[52].mxu0  ;;  %v1825_v33 = vadd.f32 %v2722_v63, %v1824_v2  ;;  %v1672_v0 = vrot.slane %v1671_v3, 4  ;;  %v2728_v26 = vpop.eup %2727 }
 0x187   : > { %v1505_v45 = vpop.f32.mrb[53].mxu0  ;;  %v2730_v44 = vpop.eup %2729  ;;  %2739 = vpow2.f32 %v1815_v27 }
 0x188   : > { %v2417_v50 = vpop.f32.mrb[52].mxu1  ;;  %v1826_v11 = vadd.f32 %v2724_v10, %v1825_v33  ;;  %v1673_v14 = vmax.f32 %v1671_v3, %v1672_v0  ;;  %2741 = vpow2.f32 %v1817_v39 }
 0x189   : > { %v3769_v1 = vadd.f32 %v2527_v42, %v2417_v50  ;;  %v928_v37 = vpop.f32.mrb[53].mxu1  ;;  %v1819_v42 = vmul.f32 1.442695, %v1789_v38  ;;  %v2732_v52 = vpop.eup %2731  ;;  %v1821_v50 = vmul.f32 1.442695, %v1790_v32 }
 0x18a   : > { %v3773_v61 = vadd.f32 %v1505_v45, %v928_v37  ;;  %v2530_v12 = vpop.f32.mrb[54].mxu0  ;;  %v1827_v40 = vadd.f32 %v2726_v21, %v1826_v11  ;;  %v1674_v24 = vrot.slane %v1673_v14, 2 }
 0x18b   : > { %v1848_v51 = vmax.f32 %v3754_v20, %v3769_v1  ;;  %v1515_v31 = vpop.f32.mrb[55].mxu0  ;;  %2743 = vpow2.f32 %v1819_v42 }
 0x18c   : > { %v1847_v46 = vmax.f32 %v3757_v43, %v3773_v61  ;;  %v2420_v23 = vpop.f32.mrb[54].mxu1  ;;  %v1828_v30 = vadd.f32 %v2728_v26, %v1827_v40  ;;  %v1675_v36 = vmax.f32 %v1673_v14, %v1674_v24  ;;  %2745 = vpow2.f32 %v1821_v50 }
 0x18d   : > { %v3781_v13 = vadd.f32 %v2530_v12, %v2420_v23  ;;  %v938_v25 = vpop.f32.mrb[55].mxu1  ;;  %v2734_v12 = vpop.eup %2733 }
 0x18e   : > { %v3785_v29 = vadd.f32 %v1515_v31, %v938_v25  ;;  %v2533_v5 = vpop.f32.mrb[56].mxu0  ;;  %v1829_v45 = vadd.f32 %v2730_v44, %v1828_v30  ;;  %v1676_v59 = vrot.slane %v1675_v36, 1  ;;  %v2736_v27 = vpop.eup %2735 }
 0x18f   : > { %v1850_v54 = vmax.f32 %v3761_v18, %v3781_v13  ;;  %v1525_v34 = vpop.f32.mrb[57].mxu0  ;;  %v2738_v26 = vpop.eup %2737 }
 0x190   : > { %v1849_v2 = vmax.f32 %v3765_v4, %v3785_v29  ;;  %v2423_v3 = vpop.f32.mrb[56].mxu1  ;;  %v1830_v37 = vadd.f32 %v2732_v52, %v1829_v45  ;;  %v3795_v10 = vmax.f32 %v1675_v36, %v1676_v59 }
 0x191   : > { %v3791_v63 = vadd.f32 %v2533_v5, %v2423_v3  ;;  %v948_v49 = vpop.f32.mrb[57].mxu1  ;;  %v2740_v30 = vpop.eup %2739 }
 0x192   : > { %v3793_v33 = vadd.f32 %v1525_v34, %v948_v49  ;;  %v2536_v0 = vpop.f32.mrb[58].mxu0  ;;  %v1831_v31 = vadd.f32 %v2734_v12, %v1830_v37  ;;  %v1678_v21 = vsub.f32 %v3661_v22, %v3795_v10  ;;  %v1679_v23 = vsub.f32 %v3659_v17, %v3795_v10  ;;  %v2742_v45 = vpop.eup %2741 }
 0x193   : > { %v3798_v19 = vmax.f32 %v1848_v51, %v3791_v63  ;;  %v1535_v55 = vpop.f32.mrb[59].mxu0  ;;  %v1680_v51 = vsub.f32 %v3669_v41, %v3795_v10  ;;  %v1682_v36 = vsub.f32 %v3679_v6, %v3795_v10  ;;  %v1683_v42 = vsub.f32 %v3675_v62, %v3795_v10 }
 0x194   : > { %v3801_v11 = vmax.f32 %v1847_v46, %v3793_v33  ;;  %v2426_v14 = vpop.f32.mrb[58].mxu1  ;;  %v1832_v24 = vadd.f32 %v2736_v27, %v1831_v31  ;;  %v1681_v46 = vsub.f32 %v3667_v35, %v3795_v10  ;;  %v1694_v5 = vmul.f32 1.442695, %v1678_v21 }
 0x195   : > { %v958_v38 = vpop.f32.mrb[59].mxu1  ;;  %v1696_v34 = vmul.f32 1.442695, %v1679_v23  ;;  %v1698_v17 = vmul.f32 1.442695, %v1680_v51  ;;  %v3813_v44 = vadd.f32 %v2536_v0, %v2426_v14  ;;  %v1684_v49 = vsub.f32 %v3689_v28, %v3795_v10  ;;  %v2744_v6 = vpop.eup %2743 }
 0x196   : > { %v2539_v40 = vpop.f32.mrb[60].mxu0  ;;  %v1833_v39 = vadd.f32 %v2738_v26, %v1832_v24  ;;  %2747 = vpow2.f32 %v1694_v5  ;;  %v1700_v35 = vmul.f32 1.442695, %v1681_v46  ;;  %v1702_v37 = vmul.f32 1.442695, %v1682_v36  ;;  %v2746_v21 = vpop.eup %2745 }
 0x197   : > { %v1545_v25 = vpop.f32.mrb[61].mxu0  ;;  %2749 = vpow2.f32 %v1696_v34  ;;  %v1685_v12 = vsub.f32 %v3687_v58, %v3795_v10  ;;  %v1686_v62 = vsub.f32 %v3699_v53, %v3795_v10  ;;  %v1704_v14 = vmul.f32 1.442695, %v1683_v42 }
 0x198   : > { %v2429_v32 = vpop.f32.mrb[60].mxu1  ;;  %v1834_v41 = vadd.f32 %v2740_v30, %v1833_v39  ;;  %2751 = vpow2.f32 %v1698_v17  ;;  %v1854_v28 = vmax.f32 %v1850_v54, %v3813_v44  ;;  %v3827_v27 = vadd.f32 %v1535_v55, %v958_v38 }
 0x199   : > { %v968_v22 = vpop.f32.mrb[61].mxu1  ;;  %2753 = vpow2.f32 %v1700_v35  ;;  %v3829_v23 = vadd.f32 %v2539_v40, %v2429_v32  ;;  %v1706_v24 = vmul.f32 1.442695, %v1684_v49  ;;  %v1708_v46 = vmul.f32 1.442695, %v1685_v12 }
 0x19a   : > { %v2542_v3 = vpop.f32.mrb[62].mxu0  ;;  %v1835_v59 = vadd.f32 %v2742_v45, %v1834_v41  ;;  %v3833_v58 = vadd.f32 %v1545_v25, %v968_v22  ;;  %2755 = vpow2.f32 %v1702_v37  ;;  %v1853_v53 = vmax.f32 %v1849_v2, %v3827_v27 }
 0x19b   : > { %v1555_v50 = vpop.f32.mrb[63].mxu0  ;;  %v1856_v54 = vmax.f32 %v3798_v19, %v3829_v23  ;;  %v1687_v25 = vsub.f32 %v3697_v48, %v3795_v10  ;;  %2757 = vpow2.f32 %v1704_v14  ;;  %v1688_v19 = vsub.f32 %v3729_v57, %v3795_v10 }
 0x19c   : > { %v2432_v52 = vpop.f32.mrb[62].mxu1  ;;  %v1836_v0 = vadd.f32 %v2744_v6, %v1835_v59  ;;  %v1855_v38 = vmax.f32 %v3801_v11, %v3833_v58  ;;  %2759 = vpow2.f32 %v1706_v24  ;;  %v1710_v22 = vmul.f32 1.442695, %v1686_v62 }
 0x19d   : > { %v978_v31 = vpop.f32.mrb[63].mxu1  ;;  %v3835_v26 = vadd.f32 %v2542_v3, %v2432_v52  ;;  %v1689_v34 = vsub.f32 %v3727_v56, %v3795_v10  ;;  %2761 = vpow2.f32 %v1708_v46  ;;  %v1712_v48 = vmul.f32 1.442695, %v1687_v25 }
 0x19e   : > { %v3831_v51 = vadd.f32 %v2746_v21, %v1836_v0  ;;  %v3843_v55 = vadd.f32 %v1555_v50, %v978_v31  ;;  %v1859_v5 = vmax.f32 %v1855_v38, %v1856_v54  ;;  %v1690_v3 = vsub.f32 %v3733_v60, %v3795_v10 }
 0x19f   : > { %v1858_v40 = vmax.f32 %v1854_v28, %v3835_v26  ;;  %2763 = vpow2.f32 %v1710_v22  ;;  %v1714_v45 = vmul.f32 1.442695, %v1688_v19  ;;  %v1691_v49 = vsub.f32 %v3731_v7, %v3795_v10 }
 0x1a0   : > { %v1857_v32 = vmax.f32 %v1853_v53, %v3843_v55  ;;  %v2748_v39 = vpop.eup %2747  ;;  %2765 = vpow2.f32 %v1712_v48  ;;  %v1716_v52 = vmul.f32 1.442695, %v1689_v34  ;;  %v1692_v37 = vsub.f32 %v3751_v16, %v3795_v10 }
 0x1a1   : > { %v2750_v2 = vpop.eup %2749  ;;  %2767 = vpow2.f32 %v1714_v45  ;;  %v1718_v0 = vmul.f32 1.442695, %v1690_v3  ;;  %v1693_v14 = vsub.f32 %v3735_v9, %v3795_v10  ;;  %v1720_v31 = vmul.f32 1.442695, %v1691_v49 }
 0x1a2   : > { %v1860_v30 = vmax.f32 %v1857_v32, %v1858_v40  ;;  %v1726_v36 = vadd.f32 %v2750_v2, %v2748_v39  ;;  %v2752_v11 = vpop.eup %2751  ;;  %2769 = vpow2.f32 %v1716_v52  ;;  %v1722_v24 = vmul.f32 1.442695, %v1692_v37 }
 0x1a3   : > { %v2754_v42 = vpop.eup %2753  ;;  %2771 = vpow2.f32 %v1718_v0  ;;  %v1648_v16 = vrot.slane %v3737_v15, 4  ;;  %v1724_v40 = vmul.f32 1.442695, %v1693_v14 }
 0x1a4   : > { %v1861_v17 = vmax.f32 %v1859_v5, %v1860_v30  ;;  %v1727_v41 = vadd.f32 %v2752_v11, %v1726_v36  ;;  %v2756_v59 = vpop.eup %2755  ;;  %2773 = vpow2.f32 %v1720_v31 }
 0x1a5   : > { %v2758_v6 = vpop.eup %2757  ;;  %2775 = vpow2.f32 %v1722_v24  ;;  %v1649_v22 = vadd.f32 %v1648_v16, %v3737_v15 }
 0x1a6   : > { %v1862_v35 = vrot.slane %v1861_v17, 4  ;;  %v1728_v57 = vadd.f32 %v2754_v42, %v1727_v41  ;;  %v2760_v62 = vpop.eup %2759  ;;  %2777 = vpow2.f32 %v1724_v40 }
 0x1a7   : > { %v2762_v28 = vpop.eup %2761  ;;  %v1650_v42 = vrot.slane %v1649_v22, 2 }
 0x1a8   : > { %v1863_v50 = vmax.f32 %v1861_v17, %v1862_v35  ;;  %v1729_v56 = vadd.f32 %v2756_v59, %v1728_v57 }
 0x1a9   : > { %v2764_v38 = vpop.eup %2763  ;;  %v1651_v49 = vadd.f32 %v1650_v42, %v1649_v22  ;;  %v1838_v42 = vrot.slane %v3831_v51, 4 }
 0x1aa   : > { %v1864_v12 = vrot.slane %v1863_v50, 2  ;;  %v1730_v60 = vadd.f32 %v2758_v6, %v1729_v56  ;;  %v2766_v32 = vpop.eup %2765 }
 0x1ab   : > { %v2768_v19 = vpop.eup %2767  ;;  %v1652_v0 = vrot.slane %v1651_v49, 1 }
 0x1ac   : > { %v1865_v21 = vmax.f32 %v1863_v50, %v1864_v12  ;;  %v1731_v7 = vadd.f32 %v2760_v62, %v1730_v60  ;;  %v2770_v11 = vpop.eup %2769 }
 0x1ad   : > { %v2772_v41 = vpop.eup %2771 }
 0x1ae   : > { %v1866_v53 = vrot.slane %v1865_v21, 1  ;;  %v1732_v54 = vadd.f32 %v2762_v28, %v1731_v7  ;;  %v2774_v45 = vpop.eup %2773  ;;  %v1653_v28 = vadd.f32 %v1652_v0, %v1651_v49 }
 0x1af   : > { %v2776_v59 = vpop.eup %2775 }
 0x1b0   : > { %v3864_v25 = vmax.f32 %v1865_v21, %v1866_v53  ;;  %v1733_v46 = vadd.f32 %v2764_v38, %v1732_v54  ;;  %v2778_v56 = vpop.eup %2777 }
 0x1b2   : > { %v1868_v9 = vsub.f32 %v3757_v43, %v3864_v25  ;;  %v1869_v39 = vsub.f32 %v3754_v20, %v3864_v25  ;;  %v1734_v5 = vadd.f32 %v2766_v32, %v1733_v46  ;;  %v1870_v2 = vsub.f32 %v3765_v4, %v3864_v25 }
 0x1b3   : > { %v1871_v36 = vsub.f32 %v3761_v18, %v3864_v25  ;;  %v1872_v43 = vsub.f32 %v3773_v61, %v3864_v25  ;;  %v1873_v15 = vsub.f32 %v3769_v1, %v3864_v25  ;;  %v1874_v18 = vsub.f32 %v3785_v29, %v3864_v25 }
 0x1b4   : > { %v1735_v30 = vadd.f32 %v2768_v19, %v1734_v5  ;;  %v1884_v34 = vmul.f32 1.442695, %v1868_v9  ;;  %v1886_v48 = vmul.f32 1.442695, %v1869_v39  ;;  %v1888_v20 = vmul.f32 1.442695, %v1870_v2 }
 0x1b5   : > { %v1890_v3 = vmul.f32 1.442695, %v1871_v36  ;;  %v1892_v57 = vmul.f32 1.442695, %v1872_v43  ;;  %v1875_v52 = vsub.f32 %v3781_v13, %v3864_v25  ;;  %v1894_v50 = vmul.f32 1.442695, %v1873_v15 }
 0x1b6   : > { %v1736_v17 = vadd.f32 %v2770_v11, %v1735_v30  ;;  %2779 = vpow2.f32 %v1884_v34  ;;  %v1876_v1 = vsub.f32 %v3793_v33, %v3864_v25  ;;  %v1896_v37 = vmul.f32 1.442695, %v1874_v18 }
 0x1b7   : > { %2781 = vpow2.f32 %v1886_v48  ;;  %v1877_v29 = vsub.f32 %v3791_v63, %v3864_v25  ;;  %v1898_v60 = vmul.f32 1.442695, %v1875_v52  ;;  %v1878_v13 = vsub.f32 %v3827_v27, %v3864_v25 }
 0x1b8   : > { %v1737_v4 = vadd.f32 %v2772_v41, %v1736_v17  ;;  %2783 = vpow2.f32 %v1888_v20  ;;  %v1900_v21 = vmul.f32 1.442695, %v1876_v1  ;;  %v1879_v33 = vsub.f32 %v3813_v44, %v3864_v25 }
 0x1b9   : > { %2785 = vpow2.f32 %v1890_v3  ;;  %v1902_v54 = vmul.f32 1.442695, %v1877_v29  ;;  %v1880_v40 = vsub.f32 %v3833_v58, %v3864_v25  ;;  %v1904_v46 = vmul.f32 1.442695, %v1878_v13 }
 0x1ba   : > { %v1738_v35 = vadd.f32 %v2774_v45, %v1737_v4  ;;  %2787 = vpow2.f32 %v1892_v57  ;;  %v1906_v27 = vmul.f32 1.442695, %v1879_v33  ;;  %v1881_v44 = vsub.f32 %v3829_v23, %v3864_v25 }
 0x1bb   : > { %2789 = vpow2.f32 %v1894_v50  ;;  %v1882_v19 = vsub.f32 %v3843_v55, %v3864_v25  ;;  %v1908_v22 = vmul.f32 1.442695, %v1880_v40  ;;  %v1883_v11 = vsub.f32 %v3835_v26, %v3864_v25 }
 0x1bc   : > { %v1739_v61 = vadd.f32 %v2776_v59, %v1738_v35  ;;  %2791 = vpow2.f32 %v1896_v37  ;;  %v1910_v34 = vmul.f32 1.442695, %v1881_v44  ;;  %v1839_v35 = vadd.f32 %v1838_v42, %v3831_v51 }
 0x1bd   : > { %2793 = vpow2.f32 %v1898_v60  ;;  %v1912_v23 = vmul.f32 1.442695, %v1882_v19  ;;  %v1914_v41 = vmul.f32 1.442695, %v1883_v11  ;;  %v1752_v40 = vstv %s1751_s25 }
 0x1be   : > { %v1740_v6 = vadd.f32 %v2778_v56, %v1739_v61  ;;  %2795 = vpow2.f32 %v1900_v21  ;;  %v1840_v50 = vrot.slane %v1839_v35, 2 }
 0x1bf   : > { %2797 = vlog2.f32 %v1653_v28 }
 0x1c0   : > { %v1741_v12 = vrot.slane %v1740_v6, 4  ;;  %v2780_v62 = vpop.eup %2779  ;;  %2799 = vpow2.f32 %v1902_v54  ;;  %v1841_v60 = vadd.f32 %v1840_v50, %v1839_v35 }
 0x1c1   : > { %v2782_v14 = vpop.eup %2781  ;;  %2801 = vpow2.f32 %v1904_v46  ;;  %v1942_v46 = vstv %s2177_s28 }
 0x1c2   : > { %v1742_v31 = vadd.f32 %v1741_v12, %v1740_v6  ;;  %v1916_v7 = vadd.f32 %v2782_v14, %v2780_v62  ;;  %v2784_v24 = vpop.eup %2783  ;;  %2803 = vpow2.f32 %v1906_v27 }
 0x1c3   : > { %v2786_v38 = vpop.eup %2785 }
 0x1c4   : > { %v1743_v53 = vrot.slane %v1742_v31, 2  ;;  %v1917_v63 = vadd.f32 %v2784_v24, %v1916_v7  ;;  %v2788_v9 = vpop.eup %2787 }
 0x1c5   : > { %v2790_v2 = vpop.eup %2789 }
 0x1c6   : > { %v1744_v16 = vadd.f32 %v1743_v53, %v1742_v31  ;;  %v1918_v32 = vadd.f32 %v2786_v38, %v1917_v63  ;;  %v2792_v36 = vpop.eup %2791  ;;  %v1842_v31 = vrot.slane %v1841_v60, 1 }
 0x1c7   : > { %v2794_v17 = vpop.eup %2793 }
 0x1c8   : > { %v1745_v39 = vrot.slane %v1744_v16, 1  ;;  %v1919_v5 = vadd.f32 %v2788_v9, %v1918_v32  ;;  %v2796_v20 = vpop.eup %2795  ;;  %v1843_v7 = vadd.f32 %v1842_v31, %v1841_v60 }
 0x1c9   : > { %v2798_v55 = vpop.eup %2797 }
 0x1ca   : > { %v1746_v30 = vadd.f32 %v1745_v39, %v1744_v16  ;;  %v1920_v58 = vadd.f32 %v2790_v2, %v1919_v5  ;;  %v2800_v15 = vpop.eup %2799  ;;  %v1655_v57 = vmul.f32 0.6931472, %v2798_v55 }
 0x1cb   : > { %v2802_v45 = vpop.eup %2801 }
 0x1cc   : > { %2805 = vlog2.f32 %v1746_v30  ;;  %v1921_v48 = vadd.f32 %v2792_v36, %v1920_v58  ;;  %v2804_v26 = vpop.eup %2803  ;;  %v1656_v6 = vadd.f32 %v1655_v57, %v3611_v8 }
 0x1cd   : > { %2807 = vpow2.f32 %v1908_v22 }
 0x1ce   : > { %v1922_v43 = vadd.f32 %v2794_v17, %v1921_v48  ;;  %2809 = vpow2.f32 %v1910_v34 }
 0x1cf   : > { %2811 = vpow2.f32 %v1912_v23 }
 0x1d0   : > { %v1923_v4 = vadd.f32 %v2796_v20, %v1922_v43  ;;  %2813 = vpow2.f32 %v1914_v41 }
 0x1d1   : > { %2815 = vlog2.f32 %v1843_v7 }
 0x1d2   : > { %v1924_v3 = vadd.f32 %v2800_v15, %v1923_v4 }
 0x1d4   : > { %v1925_v18 = vadd.f32 %v2802_v45, %v1924_v3 }
 0x1d6   : > { %v2806_v59 = vpop.eup %2805  ;;  %v1926_v49 = vadd.f32 %v2804_v26, %v1925_v18 }
 0x1d7   : > { %v1748_v61 = vmul.f32 0.6931472, %v2806_v59  ;;  %v2808_v52 = vpop.eup %2807 }
 0x1d8   : > { %v1927_v56 = vadd.f32 %v2808_v52, %v1926_v49  ;;  %v2810_v37 = vpop.eup %2809 }
 0x1d9   : > { %v1749_v1 = vadd.f32 %v1748_v61, %v3795_v10  ;;  %v2812_v29 = vpop.eup %2811 }
 0x1da   : > { %v1928_v0 = vadd.f32 %v2810_v37, %v1927_v56  ;;  %v2814_v14 = vpop.eup %2813 }
 0x1db   : > { %v1750_v12 = vadd.f32 %v1749_v1, %v1656_v6  ;;  %v2816_v8 = vpop.eup %2815 }
 0x1dc   : > { %v1929_v62 = vadd.f32 %v2812_v29, %v1928_v0  ;;  %v1845_v10 = vmul.f32 0.6931472, %v2816_v8 }
 0x1dd   : > { %v1753_v32 = vadd.f32 %v1752_v40, %v1750_v12 }
 0x1de   : > { %v1930_v51 = vadd.f32 %v2814_v14, %v1929_v62  ;;  %v1846_v38 = vadd.f32 %v1845_v10, %v3695_v47 }
 0x1e0   : > { %v1931_v13 = vrot.slane %v1930_v51, 4 }
 0x1e2   : > { %v1932_v21 = vadd.f32 %v1931_v13, %v1930_v51 }
 0x1e4   : > { %v1933_v33 = vrot.slane %v1932_v21, 2 }
 0x1e6   : > { %v1934_v28 = vadd.f32 %v1933_v33, %v1932_v21 }
 0x1e8   : > { %v1935_v24 = vrot.slane %v1934_v28, 1 }
 0x1ea   : > { %v1936_v53 = vadd.f32 %v1935_v24, %v1934_v28 }
 0x1ec   : > { %2817 = vlog2.f32 %v1936_v53 }
 0x1f6   : > { %v2818_v54 = vpop.eup %2817 }
 0x1f7   : > { %v1938_v63 = vmul.f32 0.6931472, %v2818_v54 }
 0x1f9   : > { %v1939_v16 = vadd.f32 %v1938_v63, %v3864_v25 }
 0x1fb   : > { %v1940_v27 = vadd.f32 %v1939_v16, %v1846_v38 }
 0x1fd   : > { %v1943_v9 = vadd.f32 %v1942_v46, %v1940_v27 }
 0x1ff   : > { %v1944_v39 = vmax.f32 %v1753_v32, %v1943_v9 }
 0x201   : > { %v1945_v44 = vsub.f32 %v1753_v32, %v1944_v39  ;;  %v1948_v5 = vsub.f32 %v1943_v9, %v1944_v39 }
 0x203   : > { %v1946_v2 = vmul.f32 1.442695, %v1945_v44  ;;  %v1949_v19 = vmul.f32 1.442695, %v1948_v5 }
 0x205   : > { %2819 = vpow2.f32 %v1946_v2 }
 0x206   : > { %2821 = vpow2.f32 %v1949_v19 }
 0x20f   : > { %v2820_v22 = vpop.eup %2819 }
 0x210   : > { %v2822_v47 = vpop.eup %2821 }
 0x211   : > { %v1951_v30 = vadd.f32 %v2822_v47, %v2820_v22 }
 0x213   : > { %2823 = vlog2.f32 %v1951_v30 }
 0x21d   : > { %v2824_v25 = vpop.eup %2823 }
 0x21e   : > { %v1953_v58 = vmul.f32 0.6931472, %v2824_v25 }
 0x220   : > { %v1954_v36 = vadd.f32 %v1953_v58, %v1944_v39 }
 0x222   : > { %1955 = vst [vmem:[%s266_s30] sm:$0x1] %v1954_v36 }
 0x223   : > { %2853 = shalt.err (!%p2850_p2)
}
 0x224   : > { %s2854_s20 = scalar_lea.hbm %s3910_s8, 16  ;;  %s2858_s22 = scalar_lea.hbm %s3958_s4, 32 }
 0x225   : > { %p2855_p3 = scmp.ne.s32.totalorder %s3910_s8, %s2854_s20  ;;  %p2859_p8 = scmp.lt.u32.totalorder %s3910_s8, %s3958_s4 }
 0x226   : > { %p2860_p9 = scmp.lt.u32.totalorder %s2858_s22, %s2854_s20  ;;  %p2862_p11 = scmp.lt.u32.totalorder %s2854_s20, %s3910_s8 }
 0x227   : > { %p2856_p4 = pnand %p2855_p3, %p3964_p10 }
 0x228   : > { %p2861_p5 = por %p2860_p9, %p2859_p8 }
 0x229   : > { %p2857_p7 = pneg %p2856_p4 }
 0x22a   : > { %p2863_p12 = por %p2862_p11, %p2861_p5 }
 0x22c   : > { %p2864_p13 = pnand %p2863_p12, %p2857_p7 }
 0x22e   : > { %2867 = shalt.err (!%p2864_p13)
}
 0x22f   : > { %2637 = dma.vmem_to_hbm [thread:$0]  (%p3964_p10), %s3912_s5, 16, %s3910_s8, %s1957_s9  }
 0x230 PF: > { %s1981_s28 = sand.u32 1, %s2894_s15   ;;  %p3965_p0 = scmp.ne.s32.totalorder %s3962_s27, 0 }
 0x231   : > { %s1982_s29 = scalar_lea.sflag [#allocation4], %s1981_s28 }
 0x232   : > { %p2644_p1 = pnand %p2045_p6, %p3965_p0 }
 0x234   : > { %2889 = dma.done.wait (!%p2644_p1), %s1982_s29, 16  }
 0x235   : > { %2891 = vsyncadd (!%p2644_p1), %s1982_s29, 4294967280  ;;  %p15_p2 = scmp.ge.s32.totalorder %s2960_s21, 4   ;;  %s3966_s15 = smov %s2898_s16 }
 0x236   : > { %s3967_s16 = smov %s2902_s17  ;;  %s3968_s17 = smov %s2972_s24 }
 0x237   : > { %s3969_s18 = smov %s2960_s21  ;;  %17 = sbr.rel (!%p15_p2) target bundleno = 4 (0x4), region = 119 }
 0x23e   :  { %1986 = vsyncpa [#allocation4], 1 }
 0x23f   :  { %1988 = vsyncpa [#allocation4 + $0x1], 1 }
 0x240   :  { %1989 = vsyncpa [#allocation5], 1 }
 0x241   :  { %1991 = vsyncpa [#allocation5 + $0x1], 1 }

</bundles_post_ra>
